<compile_context>
chip_gen: v5e
topology: v5e:2x2
jax: 0.10.0
libtpu: 0.0.40
codegen_flags: <defaults>
</compile_context>

<pallas_src>
import functools

import jax
import jax.numpy as jnp
from jax.experimental import pallas as pl
from jax.experimental.pallas import tpu as pltpu


def _vae_fwd_kernel(
    x_ref,              # (TB, D)   f32   flattened input tile
    we_ref, be_ref,     # (D, H) bf16, (1, H) f32     encoder hidden
    wml_ref, bml_ref,   # (H, 2Z) bf16, (1, 2Z) f32   fused [mu | logvar] head
    wd1_ref, bd1_ref,   # (Z, H) bf16, (1, H) f32     decoder hidden
    wd2_ref, bd2_ref,   # (H, D) bf16, (1, D) f32     reconstruction
    eps_ref,            # (TB, Z)  f32  fixed gaussian noise
    recon_ref,          # (TB, D)  bf16 output: reconstruction (sigmoid)
    mulv_ref,           # (TB, 2Z) f32  output: [mu | logvar] (split in wrapper)
):
    z_dim = eps_ref.shape[-1]

    # ---- encode ----  (bf16 MXU operands, f32 accumulate)
    x_b = x_ref[...].astype(jnp.bfloat16)
    h = jnp.dot(x_b, we_ref[...], preferred_element_type=jnp.float32)
    h = jnp.maximum(h + be_ref[...], 0.0)                       # f32 VPU

    mulv = jnp.dot(h.astype(jnp.bfloat16), wml_ref[...],
                   preferred_element_type=jnp.float32) + bml_ref[...]
    mulv_ref[...] = mulv                                        # lane-dense 128-wide store

    # ---- reparameterize (f32) ----
    mu = mulv[:, :z_dim]
    logvar = mulv[:, z_dim:]
    std = jnp.exp(0.5 * jnp.clip(logvar, -30.0, 20.0))          # EUP, clamped
    z = mu + std * eps_ref[...]

    # ---- decode ----
    hd = jnp.dot(z.astype(jnp.bfloat16), wd1_ref[...],
                 preferred_element_type=jnp.float32)
    hd = jnp.maximum(hd + bd1_ref[...], 0.0)
    logits = jnp.dot(hd.astype(jnp.bfloat16), wd2_ref[...],
                     preferred_element_type=jnp.float32) + bd2_ref[...]
    recon_ref[...] = jax.nn.sigmoid(logits).astype(jnp.bfloat16)  # EUP f32 -> bf16 store


def _round_up(n, m):
    return ((n + m - 1) // m) * m


def prepare_params(params):
    """One-time parameter prep (run outside the hot path).

    Fuses the mu/logvar heads into a single lane-dense (H, 2Z) matmul and casts
    all matmul weights to bf16; biases stay f32.
    """
    (we, be, wmu, bmu, wlv, blv, wd1, bd1, wd2, bd2) = params
    wml = jnp.concatenate([wmu, wlv], axis=1).astype(jnp.bfloat16)   # (H, 2Z)
    bml = jnp.concatenate([bmu, blv], axis=1).astype(jnp.float32)    # (1, 2Z)
    return (
        we.astype(jnp.bfloat16), be.astype(jnp.float32),
        wml, bml,
        wd1.astype(jnp.bfloat16), bd1.astype(jnp.float32),
        wd2.astype(jnp.bfloat16), bd2.astype(jnp.float32),
    )


@jax.jit
def vae_forward(x_nchw, prep, eps):
    """Fused VAE forward. Returns (recon_nchw[bf16], mu[f32], logvar[f32])."""
    B = x_nchw.shape[0]
    D = x_nchw.shape[1] * x_nchw.shape[2] * x_nchw.shape[3]
    x = x_nchw.reshape(B, D).astype(jnp.float32)

    (we_b, be, wml, bml, wd1_b, bd1, wd2_b, bd2) = prep
    Z = wml.shape[1] // 2

    # Batch tile: cap 512 (near the HBM-roofline sweet spot, fits v7x VMEM),
    # sized so num_tiles >= 2 whenever B allows (v7x megacore), >= 8 rows.
    TB = min(512, max(8, _round_up(-(-B // 2), 8)))
    B_pad = _round_up(B, TB)
    num_tiles = B_pad // TB

    eps_f = eps.astype(jnp.float32)
    if B_pad != B:
        x = jnp.pad(x, ((0, B_pad - B), (0, 0)))
        eps_f = jnp.pad(eps_f, ((0, B_pad - B), (0, 0)))

    def batch_spec(cols):
        return pl.BlockSpec((TB, cols), lambda i: (i, 0))

    def resident_spec(shape):
        return pl.BlockSpec(shape, lambda i: (0, 0))

    in_arrays = (x, we_b, be, wml, bml, wd1_b, bd1, wd2_b, bd2, eps_f)
    in_specs = [
        batch_spec(D),                      # x (f32; cast to bf16 in-kernel)
        resident_spec(we_b.shape), resident_spec(be.shape),
        resident_spec(wml.shape), resident_spec(bml.shape),
        resident_spec(wd1_b.shape), resident_spec(bd1.shape),
        resident_spec(wd2_b.shape), resident_spec(bd2.shape),
        batch_spec(Z),                      # eps
    ]

    out_shapes = (
        jax.ShapeDtypeStruct((B_pad, D), jnp.bfloat16),      # recon (bf16 halves HBM writes)
        jax.ShapeDtypeStruct((B_pad, 2 * Z), jnp.float32),   # [mu | logvar]
    )
    out_specs = (batch_spec(D), batch_spec(2 * Z))

    recon_p, mulv_p = pl.pallas_call(
        _vae_fwd_kernel,
        out_shape=out_shapes,
        grid_spec=pltpu.PrefetchScalarGridSpec(
            num_scalar_prefetch=0,
            grid=(num_tiles,),
            in_specs=in_specs,
            out_specs=out_specs,
        ),
        compiler_params=pltpu.CompilerParams(
            dimension_semantics=("parallel",),
            vmem_limit_bytes=32 << 20,
        ),
    )(*in_arrays)

    recon = recon_p[:B].reshape(x_nchw.shape)      # bf16
    mu = mulv_p[:B, :Z]
    logvar = mulv_p[:B, Z:]
    return recon, mu, logvar


def init_params(key, D, H, Z):
    """Deterministic synthetic parameter init (Xavier-ish scaling)."""
    ks = jax.random.split(key, 5)

    def lin(k, fan_in, fan_out):
        scale = 1.0 / jnp.sqrt(jnp.float32(fan_in))
        w = jax.random.uniform(k, (fan_in, fan_out), jnp.float32, -scale, scale)
        b = jnp.zeros((1, fan_out), jnp.float32)
        return w, b

    we, be = lin(ks[0], D, H)
    wmu, bmu = lin(ks[1], H, Z)
    wlv, blv = lin(ks[2], H, Z)
    wd1, bd1 = lin(ks[3], Z, H)
    wd2, bd2 = lin(ks[4], H, D)
    return (we, be, wmu, bmu, wlv, blv, wd1, bd1, wd2, bd2)


if __name__ == "__main__":
    # Small shapes consistent with an image VAE: batch=2, channels=4, 16x16 spatial.
    B, C, Hsp, Wsp = 2, 4, 16, 16
    D = C * Hsp * Wsp          # 1024 flattened features
    HID = 256                  # encoder/decoder hidden width
    Z = 64                     # latent dim (fused head -> 2Z = 128 lane-dense)

    key = jax.random.PRNGKey(0)
    k_x, k_p, k_eps = jax.random.split(key, 3)

    x = jax.random.uniform(k_x, (B, C, Hsp, Wsp), jnp.float32)
    params = init_params(k_p, D, HID, Z)
    prep = prepare_params(params)                       # one-time weight prep
    eps = jax.random.normal(k_eps, (B, Z), jnp.float32)  # deterministic reparam noise

    recon, mu, logvar = vae_forward(x, prep, eps)
    jax.block_until_ready((recon, mu, logvar))

    assert recon.shape == (B, C, Hsp, Wsp)
    assert recon.dtype == jnp.bfloat16
    assert mu.shape == (B, Z) and logvar.shape == (B, Z)
    assert bool(jnp.all(jnp.isfinite(recon.astype(jnp.float32))))
    assert bool(jnp.all(jnp.isfinite(mu))) and bool(jnp.all(jnp.isfinite(logvar)))

    print("KERNEL_OK")
</pallas_src>

<mosaic_0001>
module attributes {stable_mosaic.version = 11 : i64} {
  func.func @_vae_fwd_kernel(%arg0: i32, %arg1: memref<8x1024xf32, #tpu.memory_space<vmem>>, %arg2: memref<1024x256xbf16, #tpu.memory_space<vmem>>, %arg3: memref<1x256xf32, #tpu.memory_space<vmem>>, %arg4: memref<256x128xbf16, #tpu.memory_space<vmem>>, %arg5: memref<1x128xf32, #tpu.memory_space<vmem>>, %arg6: memref<64x256xbf16, #tpu.memory_space<vmem>>, %arg7: memref<1x256xf32, #tpu.memory_space<vmem>>, %arg8: memref<256x1024xbf16, #tpu.memory_space<vmem>>, %arg9: memref<1x1024xf32, #tpu.memory_space<vmem>>, %arg10: memref<8x64xf32, #tpu.memory_space<vmem>>, %arg11: memref<8x1024xbf16, #tpu.memory_space<vmem>>, %arg12: memref<8x128xf32, #tpu.memory_space<vmem>>) attributes {dimension_semantics = [#tpu.dimension_semantics<parallel>], iteration_bounds = array<i64: 1>, scalar_prefetch = 0 : i64, scratch_operands = 0 : i64, tpu.core_type = #tpu.core_type<tc>, window_params = [{transform_indices = @transform_0, window_bounds = array<i64: 8, 1024>}, {pipeline_mode = #tpu.pipeline_mode<synchronous>, transform_indices = @transform_1, window_bounds = array<i64: 1024, 256>}, {pipeline_mode = #tpu.pipeline_mode<synchronous>, transform_indices = @transform_2, window_bounds = array<i64: 1, 256>}, {pipeline_mode = #tpu.pipeline_mode<synchronous>, transform_indices = @transform_3, window_bounds = array<i64: 256, 128>}, {pipeline_mode = #tpu.pipeline_mode<synchronous>, transform_indices = @transform_4, window_bounds = array<i64: 1, 128>}, {pipeline_mode = #tpu.pipeline_mode<synchronous>, transform_indices = @transform_5, window_bounds = array<i64: 64, 256>}, {pipeline_mode = #tpu.pipeline_mode<synchronous>, transform_indices = @transform_6, window_bounds = array<i64: 1, 256>}, {pipeline_mode = #tpu.pipeline_mode<synchronous>, transform_indices = @transform_7, window_bounds = array<i64: 256, 1024>}, {pipeline_mode = #tpu.pipeline_mode<synchronous>, transform_indices = @transform_8, window_bounds = array<i64: 1, 1024>}, {transform_indices = @transform_9, window_bounds = array<i64: 8, 64>}, {transform_indices = @transform_10, window_bounds = array<i64: 8, 1024>}, {transform_indices = @transform_11, window_bounds = array<i64: 8, 128>}]} {
    %c0 = arith.constant 0 : index
    %c0_0 = arith.constant 0 : index
    %0 = vector.load %arg1[%c0, %c0_0] : memref<8x1024xf32, #tpu.memory_space<vmem>>, vector<8x1024xf32>
    %1 = arith.truncf %0 : vector<8x1024xf32> to vector<8x1024xbf16>
    %c0_1 = arith.constant 0 : index
    %c0_2 = arith.constant 0 : index
    %2 = vector.load %arg2[%c0_1, %c0_2] : memref<1024x256xbf16, #tpu.memory_space<vmem>>, vector<1024x256xbf16>
    %cst = arith.constant dense<0.000000e+00> : vector<8x256xf32>
    %3 = tpu.matmul %1, %2, %cst {dimension_numbers = #tpu.dot_dimension_numbers<[1], [0], [0], [1], [0, 0, 1, 1], [], []>} : vector<8x1024xbf16>, vector<1024x256xbf16>, vector<8x256xf32> -> vector<8x256xf32>
    %c0_3 = arith.constant 0 : index
    %c0_4 = arith.constant 0 : index
    %4 = vector.load %arg3[%c0_3, %c0_4] : memref<1x256xf32, #tpu.memory_space<vmem>>, vector<1x256xf32>
    %5 = vector.broadcast %4 : vector<1x256xf32> to vector<8x256xf32>
    %6 = arith.addf %3, %5 : vector<8x256xf32>
    %cst_5 = arith.constant 0.000000e+00 : f32
    %7 = vector.broadcast %cst_5 : f32 to vector<8x256xf32>
    %8 = arith.maximumf %6, %7 : vector<8x256xf32>
    %9 = arith.truncf %8 : vector<8x256xf32> to vector<8x256xbf16>
    %c0_6 = arith.constant 0 : index
    %c0_7 = arith.constant 0 : index
    %10 = vector.load %arg4[%c0_6, %c0_7] : memref<256x128xbf16, #tpu.memory_space<vmem>>, vector<256x128xbf16>
    %cst_8 = arith.constant dense<0.000000e+00> : vector<8x128xf32>
    %11 = tpu.matmul %9, %10, %cst_8 {dimension_numbers = #tpu.dot_dimension_numbers<[1], [0], [0], [1], [0, 0, 1, 1], [], []>} : vector<8x256xbf16>, vector<256x128xbf16>, vector<8x128xf32> -> vector<8x128xf32>
    %c0_9 = arith.constant 0 : index
    %c0_10 = arith.constant 0 : index
    %12 = vector.load %arg5[%c0_9, %c0_10] : memref<1x128xf32, #tpu.memory_space<vmem>>, vector<1x128xf32>
    %13 = vector.broadcast %12 : vector<1x128xf32> to vector<8x128xf32>
    %14 = arith.addf %11, %13 : vector<8x128xf32>
    %c0_11 = arith.constant 0 : index
    %c0_12 = arith.constant 0 : index
    %15 = vector.load %arg12[%c0_11, %c0_12] : memref<8x128xf32, #tpu.memory_space<vmem>>, vector<8x128xf32>
    tpu.vector_store %arg12[%c0_11, %c0_12], %14 {strides = array<i32>} : memref<8x128xf32, #tpu.memory_space<vmem>>, vector<8x128xf32>,
    %16 = vector.extract_strided_slice %14 {offsets = [0, 0], sizes = [8, 64], strides = [1, 1]} : vector<8x128xf32> to vector<8x64xf32>
    %17 = vector.extract_strided_slice %14 {offsets = [0, 64], sizes = [8, 64], strides = [1, 1]} : vector<8x128xf32> to vector<8x64xf32>
    %cst_13 = arith.constant -3.000000e+01 : f32
    %cst_14 = arith.constant 2.000000e+01 : f32
    %18 = vector.broadcast %cst_13 : f32 to vector<8x64xf32>
    %19 = arith.maximumf %18, %17 : vector<8x64xf32>
    %20 = vector.broadcast %cst_14 : f32 to vector<8x64xf32>
    %21 = arith.minimumf %20, %19 : vector<8x64xf32>
    %cst_15 = arith.constant 5.000000e-01 : f32
    %22 = vector.broadcast %cst_15 : f32 to vector<8x64xf32>
    %23 = arith.mulf %22, %21 : vector<8x64xf32>
    %24 = math.exp %23 : vector<8x64xf32>
    %c0_16 = arith.constant 0 : index
    %c0_17 = arith.constant 0 : index
    %25 = vector.load %arg10[%c0_16, %c0_17] : memref<8x64xf32, #tpu.memory_space<vmem>>, vector<8x64xf32>
    %26 = arith.mulf %24, %25 : vector<8x64xf32>
    %27 = arith.addf %16, %26 : vector<8x64xf32>
    %28 = arith.truncf %27 : vector<8x64xf32> to vector<8x64xbf16>
    %c0_18 = arith.constant 0 : index
    %c0_19 = arith.constant 0 : index
    %29 = vector.load %arg6[%c0_18, %c0_19] : memref<64x256xbf16, #tpu.memory_space<vmem>>, vector<64x256xbf16>
    %cst_20 = arith.constant dense<0.000000e+00> : vector<8x256xf32>
    %30 = tpu.matmul %28, %29, %cst_20 {dimension_numbers = #tpu.dot_dimension_numbers<[1], [0], [0], [1], [0, 0, 1, 1], [], []>} : vector<8x64xbf16>, vector<64x256xbf16>, vector<8x256xf32> -> vector<8x256xf32>
    %c0_21 = arith.constant 0 : index
    %c0_22 = arith.constant 0 : index
    %31 = vector.load %arg7[%c0_21, %c0_22] : memref<1x256xf32, #tpu.memory_space<vmem>>, vector<1x256xf32>
    %32 = vector.broadcast %31 : vector<1x256xf32> to vector<8x256xf32>
    %33 = arith.addf %30, %32 : vector<8x256xf32>
    %cst_23 = arith.constant 0.000000e+00 : f32
    %34 = vector.broadcast %cst_23 : f32 to vector<8x256xf32>
    %35 = arith.maximumf %33, %34 : vector<8x256xf32>
    %36 = arith.truncf %35 : vector<8x256xf32> to vector<8x256xbf16>
    %c0_24 = arith.constant 0 : index
    %c0_25 = arith.constant 0 : index
    %37 = vector.load %arg8[%c0_24, %c0_25] : memref<256x1024xbf16, #tpu.memory_space<vmem>>, vector<256x1024xbf16>
    %cst_26 = arith.constant dense<0.000000e+00> : vector<8x1024xf32>
    %38 = tpu.matmul %36, %37, %cst_26 {dimension_numbers = #tpu.dot_dimension_numbers<[1], [0], [0], [1], [0, 0, 1, 1], [], []>} : vector<8x256xbf16>, vector<256x1024xbf16>, vector<8x1024xf32> -> vector<8x1024xf32>
    %c0_27 = arith.constant 0 : index
    %c0_28 = arith.constant 0 : index
    %39 = vector.load %arg9[%c0_27, %c0_28] : memref<1x1024xf32, #tpu.memory_space<vmem>>, vector<1x1024xf32>
    %40 = vector.broadcast %39 : vector<1x1024xf32> to vector<8x1024xf32>
    %41 = arith.addf %38, %40 : vector<8x1024xf32>
    %42 = arith.negf %41 : vector<8x1024xf32>
    %43 = math.exp %42 : vector<8x1024xf32>
    %cst_29 = arith.constant 1.000000e+00 : f32
    %44 = vector.broadcast %cst_29 : f32 to vector<8x1024xf32>
    %45 = arith.addf %44, %43 : vector<8x1024xf32>
    %46 = arith.divf %44, %45 : vector<8x1024xf32>
    %47 = arith.truncf %46 : vector<8x1024xf32> to vector<8x1024xbf16>
    %c0_30 = arith.constant 0 : index
    %c0_31 = arith.constant 0 : index
    %48 = vector.load %arg11[%c0_30, %c0_31] : memref<8x1024xbf16, #tpu.memory_space<vmem>>, vector<8x1024xbf16>
    tpu.vector_store %arg11[%c0_30, %c0_31], %47 {strides = array<i32>} : memref<8x1024xbf16, #tpu.memory_space<vmem>>, vector<8x1024xbf16>,
    return
  }
  func.func @transform_0(%arg0: i32) -> (i32, i32) {
    %c0_i32 = arith.constant 0 : i32
    %c0_i32_0 = arith.constant 0 : i32
    return %arg0, %c0_i32 : i32, i32
  }
  func.func @transform_1(%arg0: i32) -> (i32, i32) {
    %c0_i32 = arith.constant 0 : i32
    %c0_i32_0 = arith.constant 0 : i32
    %c0_i32_1 = arith.constant 0 : i32
    return %c0_i32, %c0_i32_0 : i32, i32
  }
  func.func @transform_2(%arg0: i32) -> (i32, i32) {
    %c0_i32 = arith.constant 0 : i32
    %c0_i32_0 = arith.constant 0 : i32
    %c0_i32_1 = arith.constant 0 : i32
    return %c0_i32, %c0_i32_0 : i32, i32
  }
  func.func @transform_3(%arg0: i32) -> (i32, i32) {
    %c0_i32 = arith.constant 0 : i32
    %c0_i32_0 = arith.constant 0 : i32
    %c0_i32_1 = arith.constant 0 : i32
    return %c0_i32, %c0_i32_0 : i32, i32
  }
  func.func @transform_4(%arg0: i32) -> (i32, i32) {
    %c0_i32 = arith.constant 0 : i32
    %c0_i32_0 = arith.constant 0 : i32
    %c0_i32_1 = arith.constant 0 : i32
    return %c0_i32, %c0_i32_0 : i32, i32
  }
  func.func @transform_5(%arg0: i32) -> (i32, i32) {
    %c0_i32 = arith.constant 0 : i32
    %c0_i32_0 = arith.constant 0 : i32
    %c0_i32_1 = arith.constant 0 : i32
    return %c0_i32, %c0_i32_0 : i32, i32
  }
  func.func @transform_6(%arg0: i32) -> (i32, i32) {
    %c0_i32 = arith.constant 0 : i32
    %c0_i32_0 = arith.constant 0 : i32
    %c0_i32_1 = arith.constant 0 : i32
    return %c0_i32, %c0_i32_0 : i32, i32
  }
  func.func @transform_7(%arg0: i32) -> (i32, i32) {
    %c0_i32 = arith.constant 0 : i32
    %c0_i32_0 = arith.constant 0 : i32
    %c0_i32_1 = arith.constant 0 : i32
    return %c0_i32, %c0_i32_0 : i32, i32
  }
  func.func @transform_8(%arg0: i32) -> (i32, i32) {
    %c0_i32 = arith.constant 0 : i32
    %c0_i32_0 = arith.constant 0 : i32
    %c0_i32_1 = arith.constant 0 : i32
    return %c0_i32, %c0_i32_0 : i32, i32
  }
  func.func @transform_9(%arg0: i32) -> (i32, i32) {
    %c0_i32 = arith.constant 0 : i32
    %c0_i32_0 = arith.constant 0 : i32
    return %arg0, %c0_i32 : i32, i32
  }
  func.func @transform_10(%arg0: i32) -> (i32, i32) {
    %c0_i32 = arith.constant 0 : i32
    %c0_i32_0 = arith.constant 0 : i32
    return %arg0, %c0_i32 : i32, i32
  }
  func.func @transform_11(%arg0: i32) -> (i32, i32) {
    %c0_i32 = arith.constant 0 : i32
    %c0_i32_0 = arith.constant 0 : i32
    return %arg0, %c0_i32 : i32, i32
  }
}

</mosaic_0001>

<bundles_post_ra>
// kernel: vae_forward.1
= control target key start
LH: loop header
LB: loop body
LE: loop exit
PB: predicated region body
PF: predicated region fallthrough
CT: control target
= control target key end

     0   :  { %17 = vsyncpa [#allocation3], 0  ;;  %s4317_s0 = inlined_call_operand.vmem [shape: f32[8,1024], index: 0, kind: input, shape index: {}]   ;;  %s4318_s1 = inlined_call_operand.hbm [shape: bf16[1024,256], index: 1, kind: input, shape index: {}]   ;;  %s4319_s2 = inlined_call_operand.vmem [shape: f32[1,256], index: 2, kind: input, shape index: {}]   ;;  %s4320_s3 = inlined_call_operand.vmem [shape: bf16[256,128], index: 3, kind: input, shape index: {}]   ;;  %s4321_s4 = inlined_call_operand.vmem [shape: f32[1,128], index: 4, kind: input, shape index: {}]   ;;  %s4322_s5 = inlined_call_operand.vmem [shape: bf16[64,256], index: 5, kind: input, shape index: {}]   ;;  %s4323_s6 = inlined_call_operand.vmem [shape: f32[1,256], index: 6, kind: input, shape index: {}]   ;;  %s4324_s7 = inlined_call_operand.hbm [shape: bf16[256,1024], index: 7, kind: input, shape index: {}]   ;;  %s4325_s8 = inlined_call_operand.vmem [shape: f32[1,1024], index: 8, kind: input, shape index: {}]   ;;  %s4326_s9 = inlined_call_operand.vmem [shape: f32[8,64], index: 9, kind: input, shape index: {}]   ;;  %s4327_s10 = inlined_call_operand.vmem [shape: bf16[8,1024], index: 10, kind: output, shape index: {0}]   ;;  %s4328_s11 = inlined_call_operand.vmem [shape: f32[8,128], index: 11, kind: output, shape index: {1}]  }
   0x1   :  { %s25_s19 = sshll.u32 %s4318_s1, 4  ;;  %s26_s19 = int_to_ptr.hbm [resolvable:$true] %s25_s19 }
   0x2   :  { %18 = vsyncpa [#allocation5], 0  ;;  %s4004_s20 = smov [#allocation2]   ;;  %s48_s24 = sshll.u32 %s4324_s7, 4  ;;  %s49_s24 = int_to_ptr.hbm [resolvable:$true] %s48_s24 }
   0x3   :  { %s27_s21 = sshll.u32 %s4004_s20, 4  ;;  %s4005_s25 = smov 128   ;;  %s28_s21 = int_to_ptr.vmem [resolvable:$true] %s27_s21 }
   0x4   :  { %s4006_s26 = smov 8   ;;  %s4007_s27 = smov [#allocation4]  }
   0x5   :  { %33 = dma.hbm_to_vmem [thread:$0]  %s26_s19, 16384, %s28_s21, [#allocation3], %s4005_s25, %s4005_s25, %s4006_s26  }
   0x6   :  { %s50_s28 = sshll.u32 %s4007_s27, 4  ;;  %s4008_s29 = smov 512   ;;  %s51_s28 = int_to_ptr.vmem [resolvable:$true] %s50_s28 }
   0x7   :  { %s4009_s30 = smov 32  }
   0x8   :  { %56 = dma.hbm_to_vmem [thread:$0]  %s49_s24, 16384, %s51_s28, [#allocation5], %s4008_s29, %s4008_s29, %s4009_s30  }
   0x9   :  { %4000 = dma.done.wait [#allocation3], 16384  }
   0xa   :  { %4001 = vsyncadd [#allocation3], 4294950912 }
   0xb   :  { %4002 = dma.done.wait [#allocation5], 16384  }
   0xc   :  { %4003 = vsyncadd [#allocation5], 4294950912  ;;  %v2558_v0 = vld [vmem:[#allocation2 + $0x70] sm:$0xf]  ;;  %v3645_v1 = vld [vmem:[#allocation2 + $0x74] sm:$0xf0] }
   0xd   :  { %v2622_v2 = vld [vmem:[#allocation2 + $0xf0] sm:$0xf]  ;;  %v2559_v3 = vor.u32 %v3645_v1, %v2558_v0  ;;  %v3661_v4 = vld [vmem:[#allocation2 + $0xf4] sm:$0xf0]  ;;  %v2550_v11 = vld [vmem:[#allocation2 + $0x60] sm:$0xf] }
   0xe   :  { %v2686_v5 = vld [vmem:[#allocation2 + $0x170] sm:$0xf]  ;;  %v3677_v6 = vld [vmem:[#allocation2 + $0x174] sm:$0xf0]  ;;  %v2623_v7 = vor.u32 %v3661_v4, %v2622_v2  ;;  %v3643_v13 = vld [vmem:[#allocation2 + $0x64] sm:$0xf0] }
   0xf   :  { %v2687_v8 = vor.u32 %v3677_v6, %v2686_v5  ;;  %v2750_v9 = vld [vmem:[#allocation2 + $0x1f0] sm:$0xf]  ;;  %v3693_v10 = vld [vmem:[#allocation2 + $0x1f4] sm:$0xf0]  ;;  %860 = vmatpush.bf16.msra.mxu0 %v2559_v3  ;;  %v2614_v14 = vld [vmem:[#allocation2 + $0xe0] sm:$0xf]  ;;  %v2551_v16 = vor.u32 %v3643_v13, %v2550_v11 }
  0x10   :  { %v2751_v12 = vor.u32 %v3693_v10, %v2750_v9  ;;  %v3659_v15 = vld [vmem:[#allocation2 + $0xe4] sm:$0xf0]  ;;  %873 = vmatpush.bf16.msra.mxu1 %v2623_v7  ;;  %v2678_v18 = vld [vmem:[#allocation2 + $0x160] sm:$0xf]  ;;  %v2542_v23 = vld [vmem:[#allocation2 + $0x50] sm:$0xf] }
  0x11   :  { %886 = vmatpush.bf16.msra.mxu2 %v2687_v8  ;;  %v2615_v17 = vor.u32 %v3659_v15, %v2614_v14  ;;  %v3675_v19 = vld [vmem:[#allocation2 + $0x164] sm:$0xf0]  ;;  %v2742_v20 = vld [vmem:[#allocation2 + $0x1e0] sm:$0xf]  ;;  %v3641_v24 = vld [vmem:[#allocation2 + $0x54] sm:$0xf0] }
  0x12   :  { %899 = vmatpush.bf16.msra.mxu3 %v2751_v12  ;;  %v2679_v21 = vor.u32 %v3675_v19, %v2678_v18  ;;  %v3691_v22 = vld [vmem:[#allocation2 + $0x1e4] sm:$0xf0]  ;;  %v2606_v26 = vld [vmem:[#allocation2 + $0xd0] sm:$0xf]  ;;  %v3657_v27 = vld [vmem:[#allocation2 + $0xd4] sm:$0xf0]  ;;  %v2543_v29 = vor.u32 %v3641_v24, %v2542_v23 }
  0x13   :  { %v2743_v25 = vor.u32 %v3691_v22, %v2742_v20  ;;  %v2670_v28 = vld [vmem:[#allocation2 + $0x150] sm:$0xf]  ;;  %861 = vmatpush.bf16.msra.mxu0 %v2551_v16  ;;  %v3673_v30 = vld [vmem:[#allocation2 + $0x154] sm:$0xf0]  ;;  %v2607_v33 = vor.u32 %v3657_v27, %v2606_v26  ;;  %v2534_v35 = vld [vmem:[#allocation2 + $0x40] sm:$0xf] }
  0x14   :  { %v2734_v31 = vld [vmem:[#allocation2 + $0x1d0] sm:$0xf]  ;;  %v3689_v32 = vld [vmem:[#allocation2 + $0x1d4] sm:$0xf0]  ;;  %874 = vmatpush.bf16.msra.mxu1 %v2615_v17  ;;  %v2671_v34 = vor.u32 %v3673_v30, %v2670_v28  ;;  %v3639_v36 = vld [vmem:[#allocation2 + $0x44] sm:$0xf0] }
  0x15   :  { %887 = vmatpush.bf16.msra.mxu2 %v2679_v21  ;;  %v2598_v37 = vld [vmem:[#allocation2 + $0xc0] sm:$0xf]  ;;  %v2735_v38 = vor.u32 %v3689_v32, %v2734_v31  ;;  %v3655_v39 = vld [vmem:[#allocation2 + $0xc4] sm:$0xf0]  ;;  %v2535_v44 = vor.u32 %v3639_v36, %v2534_v35  ;;  %v2526_v47 = vld [vmem:[#allocation2 + $0x30] sm:$0xf] }
  0x16   :  { %900 = vmatpush.bf16.msra.mxu3 %v2743_v25  ;;  %v2662_v40 = vld [vmem:[#allocation2 + $0x140] sm:$0xf]  ;;  %v3671_v41 = vld [vmem:[#allocation2 + $0x144] sm:$0xf0]  ;;  %v2599_v45 = vor.u32 %v3655_v39, %v2598_v37  ;;  %v3637_v48 = vld [vmem:[#allocation2 + $0x34] sm:$0xf0] }
  0x17   :  { %v2726_v42 = vld [vmem:[#allocation2 + $0x1c0] sm:$0xf]  ;;  %v3687_v43 = vld [vmem:[#allocation2 + $0x1c4] sm:$0xf0]  ;;  %862 = vmatpush.bf16.msra.mxu0 %v2543_v29  ;;  %v2663_v46 = vor.u32 %v3671_v41, %v2662_v40  ;;  %v2590_v49 = vld [vmem:[#allocation2 + $0xb0] sm:$0xf]  ;;  %v2527_v56 = vor.u32 %v3637_v48, %v2526_v47 }
  0x18   :  { %875 = vmatpush.bf16.msra.mxu1 %v2607_v33  ;;  %v2727_v50 = vor.u32 %v3687_v43, %v2726_v42  ;;  %v3653_v51 = vld [vmem:[#allocation2 + $0xb4] sm:$0xf0]  ;;  %v2654_v52 = vld [vmem:[#allocation2 + $0x130] sm:$0xf]  ;;  %v2518_v59 = vld [vmem:[#allocation2 + $0x20] sm:$0xf] }
  0x19   :  { %888 = vmatpush.bf16.msra.mxu2 %v2671_v34  ;;  %v3669_v53 = vld [vmem:[#allocation2 + $0x134] sm:$0xf0]  ;;  %v2718_v54 = vld [vmem:[#allocation2 + $0x1b0] sm:$0xf]  ;;  %v2591_v57 = vor.u32 %v3653_v51, %v2590_v49  ;;  %v3635_v60 = vld [vmem:[#allocation2 + $0x24] sm:$0xf0] }
  0x1a   :  { %901 = vmatpush.bf16.msra.mxu3 %v2735_v38  ;;  %v3685_v55 = vld [vmem:[#allocation2 + $0x1b4] sm:$0xf0]  ;;  %v2655_v58 = vor.u32 %v3669_v53, %v2654_v52  ;;  %v2582_v61 = vld [vmem:[#allocation2 + $0xa0] sm:$0xf]  ;;  %v3651_v63 = vld [vmem:[#allocation2 + $0xa4] sm:$0xf0]  ;;  %v2519_v4 = vor.u32 %v3635_v60, %v2518_v59 }
  0x1b   :  { %863 = vmatpush.bf16.msra.mxu0 %v2535_v44  ;;  %v2719_v62 = vor.u32 %v3685_v55, %v2718_v54  ;;  %v2646_v0 = vld [vmem:[#allocation2 + $0x120] sm:$0xf]  ;;  %v3667_v1 = vld [vmem:[#allocation2 + $0x124] sm:$0xf0]  ;;  %v2583_v5 = vor.u32 %v3651_v63, %v2582_v61  ;;  %v2510_v7 = vld [vmem:[#allocation2 + $0x10] sm:$0xf] }
  0x1c   :  { %876 = vmatpush.bf16.msra.mxu1 %v2599_v45  ;;  %v2710_v2 = vld [vmem:[#allocation2 + $0x1a0] sm:$0xf]  ;;  %v3683_v3 = vld [vmem:[#allocation2 + $0x1a4] sm:$0xf0]  ;;  %v2647_v6 = vor.u32 %v3667_v1, %v2646_v0  ;;  %v3633_v8 = vld [vmem:[#allocation2 + $0x14] sm:$0xf0] }
  0x1d   :  { %889 = vmatpush.bf16.msra.mxu2 %v2663_v46  ;;  %v2574_v9 = vld [vmem:[#allocation2 + $0x90] sm:$0xf]  ;;  %v2711_v10 = vor.u32 %v3683_v3, %v2710_v2  ;;  %v3649_v11 = vld [vmem:[#allocation2 + $0x94] sm:$0xf0]  ;;  %v2511_v16 = vor.u32 %v3633_v8, %v2510_v7  ;;  %v2502_v17 = vld [vmem:[#allocation2] sm:$0xf] }
  0x1e   :  { %902 = vmatpush.bf16.msra.mxu3 %v2727_v50  ;;  %v2638_v12 = vld [vmem:[#allocation2 + $0x110] sm:$0xf]  ;;  %v3665_v13 = vld [vmem:[#allocation2 + $0x114] sm:$0xf0]  ;;  %v3631_v18 = vld [vmem:[#allocation2 + $0x4] sm:$0xf0]  ;;  %v2575_v19 = vor.u32 %v3649_v11, %v2574_v9 }
  0x1f   :  { %864 = vmatpush.bf16.msra.mxu0 %v2527_v56  ;;  %v2702_v14 = vld [vmem:[#allocation2 + $0x190] sm:$0xf]  ;;  %v3681_v15 = vld [vmem:[#allocation2 + $0x194] sm:$0xf0]  ;;  %v2639_v20 = vor.u32 %v3665_v13, %v2638_v12  ;;  %v2566_v21 = vld [vmem:[#allocation2 + $0x80] sm:$0xf]  ;;  %v2503_v31 = vor.u32 %v3631_v18, %v2502_v17 }
  0x20   :  { %877 = vmatpush.bf16.msra.mxu1 %v2591_v57  ;;  %v3647_v22 = vld [vmem:[#allocation2 + $0x84] sm:$0xf0]  ;;  %v2630_v23 = vld [vmem:[#allocation2 + $0x100] sm:$0xf]  ;;  %v2703_v24 = vor.u32 %v3681_v15, %v2702_v14  ;;  %v2814_v28 = vld [vmem:[#allocation2 + $0x270] sm:$0xf] }
  0x21   :  { %890 = vmatpush.bf16.msra.mxu2 %v2655_v58  ;;  %v3663_v25 = vld [vmem:[#allocation2 + $0x104] sm:$0xf0]  ;;  %v2694_v26 = vld [vmem:[#allocation2 + $0x180] sm:$0xf]  ;;  %v3709_v29 = vld [vmem:[#allocation2 + $0x274] sm:$0xf0]  ;;  %v2567_v35 = vor.u32 %v3647_v22, %v2566_v21 }
  0x22   :  { %903 = vmatpush.bf16.msra.mxu3 %v2719_v62  ;;  %v3679_v27 = vld [vmem:[#allocation2 + $0x184] sm:$0xf0]  ;;  %v2878_v30 = vld [vmem:[#allocation2 + $0x2f0] sm:$0xf]  ;;  %v3725_v32 = vld [vmem:[#allocation2 + $0x2f4] sm:$0xf0]  ;;  %v2631_v36 = vor.u32 %v3663_v25, %v2630_v23  ;;  %v2815_v40 = vor.u32 %v3709_v29, %v2814_v28 }
  0x23   :  { %865 = vmatpush.bf16.msra.mxu0 %v2519_v4  ;;  %v2942_v33 = vld [vmem:[#allocation2 + $0x370] sm:$0xf]  ;;  %v3741_v34 = vld [vmem:[#allocation2 + $0x374] sm:$0xf0]  ;;  %v2695_v39 = vor.u32 %v3679_v27, %v2694_v26  ;;  %v2879_v41 = vor.u32 %v3725_v32, %v2878_v30  ;;  %v2806_v43 = vld [vmem:[#allocation2 + $0x260] sm:$0xf] }
  0x24   :  { %878 = vmatpush.bf16.msra.mxu1 %v2583_v5  ;;  %v3006_v37 = vld [vmem:[#allocation2 + $0x3f0] sm:$0xf]  ;;  %v3757_v38 = vld [vmem:[#allocation2 + $0x3f4] sm:$0xf0]  ;;  %v2943_v42 = vor.u32 %v3741_v34, %v2942_v33  ;;  %v3707_v44 = vld [vmem:[#allocation2 + $0x264] sm:$0xf0] }
  0x25   :  { %891 = vmatpush.bf16.msra.mxu2 %v2647_v6  ;;  %v2870_v45 = vld [vmem:[#allocation2 + $0x2e0] sm:$0xf]  ;;  %v3007_v46 = vor.u32 %v3757_v38, %v3006_v37  ;;  %v3723_v47 = vld [vmem:[#allocation2 + $0x2e4] sm:$0xf0]  ;;  %v72_v52 = vld [vmem:[%s4317_s0 + $0x10] sm:$0xff]  ;;  %v2807_v53 = vor.u32 %v3707_v44, %v2806_v43  ;;  %s4010_s17 = smov 64  }
  0x26   :  { %904 = vmatpush.bf16.msra.mxu3 %v2711_v10  ;;  %v2934_v48 = vld [vmem:[#allocation2 + $0x360] sm:$0xf]  ;;  %v3739_v49 = vld [vmem:[#allocation2 + $0x364] sm:$0xf0]  ;;  %v2798_v54 = vld [vmem:[#allocation2 + $0x250] sm:$0xf]  ;;  %v4080_v57 = vpack.c.bf16 %v72_v52, %v72_v52  ;;  %v2871_v58 = vor.u32 %v3723_v47, %v2870_v45 }
  0x27   :  { %866 = vmatpush.bf16.msra.mxu0 %v2511_v16  ;;  %v2998_v50 = vld [vmem:[#allocation2 + $0x3e0] sm:$0xf]  ;;  %v3755_v51 = vld [vmem:[#allocation2 + $0x3e4] sm:$0xf0]  ;;  %v3705_v55 = vld [vmem:[#allocation2 + $0x254] sm:$0xf0]  ;;  %v2935_v59 = vor.u32 %v3739_v49, %v2934_v48 }
  0x28   :  { %879 = vmatpush.bf16.msra.mxu1 %v2575_v19  ;;  %v2862_v56 = vld [vmem:[#allocation2 + $0x2d0] sm:$0xf]  ;;  %v3721_v60 = vld [vmem:[#allocation2 + $0x2d4] sm:$0xf0]  ;;  %v2999_v63 = vor.u32 %v3755_v51, %v2998_v50  ;;  %v70_v0 = vld [vmem:[%s4317_s0] sm:$0xff]  ;;  %v2799_v8 = vor.u32 %v3705_v55, %v2798_v54  ;;  %vm1302_vm0 = vcmask 523264  }
  0x29   :  { %892 = vmatpush.bf16.msra.mxu2 %v2639_v20  ;;  %v2926_v61 = vld [vmem:[#allocation2 + $0x350] sm:$0xf]  ;;  %v3737_v62 = vld [vmem:[#allocation2 + $0x354] sm:$0xf0]  ;;  %v71_v2 = vld [vmem:[%s4317_s0 + $0x8] sm:$0xff]  ;;  %v4092_v5 = vpack.c.bf16 %v70_v0, %v70_v0  ;;  %v2863_v9 = vor.u32 %v3721_v60, %v2862_v56 }
  0x2a   :  { %905 = vmatpush.bf16.msra.mxu3 %v2703_v24  ;;  %v73_v1 = vld [vmem:[%s4317_s0 + $0x18] sm:$0xff]  ;;  %v2990_v3 = vld [vmem:[#allocation2 + $0x3d0] sm:$0xf]  ;;  %v4096_v7 = vpack.c.bf16 %v71_v2, %v71_v2  ;;  %v2927_v10 = vor.u32 %v3737_v62, %v2926_v61  ;;  %v2790_v11 = vld [vmem:[#allocation2 + $0x240] sm:$0xf] }
  0x2b   :  { %867 = vmatpush.bf16.msra.mxu0 %v2503_v31  ;;  %v3753_v4 = vld [vmem:[#allocation2 + $0x3d4] sm:$0xf0]  ;;  %v4094_v6 = vpack.c.bf16 %v73_v1, %v73_v1  ;;  %v3703_v12 = vld [vmem:[#allocation2 + $0x244] sm:$0xf0]  ;;  %v2854_v13 = vld [vmem:[#allocation2 + $0x2c0] sm:$0xf] }
  0x2c   :  { %880 = vmatpush.bf16.msra.mxu1 %v2567_v35  ;;  %v2991_v14 = vor.u32 %v3753_v4, %v2990_v3  ;;  %v3719_v15 = vld [vmem:[#allocation2 + $0x2c4] sm:$0xf0]  ;;  %v2918_v16 = vld [vmem:[#allocation2 + $0x340] sm:$0xf]  ;;  %v2791_v20 = vor.u32 %v3703_v12, %v2790_v11  ;;  %v2782_v23 = vld [vmem:[#allocation2 + $0x230] sm:$0xf] }
  0x2d   :  { %893 = vmatpush.bf16.msra.mxu2 %v2631_v36  ;;  %v3735_v17 = vld [vmem:[#allocation2 + $0x344] sm:$0xf0]  ;;  %v2982_v18 = vld [vmem:[#allocation2 + $0x3c0] sm:$0xf]  ;;  %v2855_v21 = vor.u32 %v3719_v15, %v2854_v13  ;;  %v3701_v24 = vld [vmem:[#allocation2 + $0x234] sm:$0xf0] }
  0x2e   :  { %906 = vmatpush.bf16.msra.mxu3 %v2695_v39  ;;  %868 = vmatmul.bf16.vlgmr.msra.gmra.mxu0 %v4092_v5  ;;  %v3751_v19 = vld [vmem:[#allocation2 + $0x3c4] sm:$0xf0]  ;;  %v2919_v22 = vor.u32 %v3735_v17, %v2918_v16  ;;  %v2846_v25 = vld [vmem:[#allocation2 + $0x2b0] sm:$0xf]  ;;  %v3717_v27 = vld [vmem:[#allocation2 + $0x2b4] sm:$0xf0]  ;;  %v2783_v32 = vor.u32 %v3701_v24, %v2782_v23 }
  0x2f   :  { %912 = vmatpush.bf16.msrb.mxu0 %v2815_v40  ;;  %881 = vmatmul.bf16.vlgmr.msra.gmra.mxu1 %v4096_v7  ;;  %v2983_v26 = vor.u32 %v3751_v19, %v2982_v18  ;;  %v2910_v28 = vld [vmem:[#allocation2 + $0x330] sm:$0xf]  ;;  %v3733_v29 = vld [vmem:[#allocation2 + $0x334] sm:$0xf0]  ;;  %v2847_v33 = vor.u32 %v3717_v27, %v2846_v25  ;;  %v2774_v35 = vld [vmem:[#allocation2 + $0x220] sm:$0xf] }
  0x30   :  { %925 = vmatpush.bf16.msrb.mxu1 %v2879_v41  ;;  %894 = vmatmul.bf16.vlgmr.msra.gmra.mxu2 %v4080_v57  ;;  %v2974_v30 = vld [vmem:[#allocation2 + $0x3b0] sm:$0xf]  ;;  %v3749_v31 = vld [vmem:[#allocation2 + $0x3b4] sm:$0xf0]  ;;  %v2911_v34 = vor.u32 %v3733_v29, %v2910_v28  ;;  %v3699_v36 = vld [vmem:[#allocation2 + $0x224] sm:$0xf0] }
  0x31   :  { %938 = vmatpush.bf16.msrb.mxu2 %v2943_v42  ;;  %907 = vmatmul.bf16.vlgmr.msra.gmra.mxu3 %v4094_v6  ;;  %v2838_v37 = vld [vmem:[#allocation2 + $0x2a0] sm:$0xf]  ;;  %v2975_v38 = vor.u32 %v3749_v31, %v2974_v30  ;;  %v3715_v39 = vld [vmem:[#allocation2 + $0x2a4] sm:$0xf0]  ;;  %v2775_v44 = vor.u32 %v3699_v36, %v2774_v35  ;;  %v2766_v47 = vld [vmem:[#allocation2 + $0x210] sm:$0xf] }
  0x32   :  { %951 = vmatpush.bf16.msrb.mxu3 %v3007_v46  ;;  %v2902_v40 = vld [vmem:[#allocation2 + $0x320] sm:$0xf]  ;;  %v3731_v41 = vld [vmem:[#allocation2 + $0x324] sm:$0xf0]  ;;  %v2839_v45 = vor.u32 %v3715_v39, %v2838_v37  ;;  %v3697_v48 = vld [vmem:[#allocation2 + $0x214] sm:$0xf0] }
  0x33   :  { %913 = vmatpush.bf16.msrb.mxu0 %v2807_v53  ;;  %v2966_v42 = vld [vmem:[#allocation2 + $0x3a0] sm:$0xf]  ;;  %v3747_v43 = vld [vmem:[#allocation2 + $0x3a4] sm:$0xf0]  ;;  %v2903_v46 = vor.u32 %v3731_v41, %v2902_v40  ;;  %v2830_v49 = vld [vmem:[#allocation2 + $0x290] sm:$0xf]  ;;  %v2767_v56 = vor.u32 %v3697_v48, %v2766_v47 }
  0x34   :  { %926 = vmatpush.bf16.msrb.mxu1 %v2871_v58  ;;  %v2967_v50 = vor.u32 %v3747_v43, %v2966_v42  ;;  %v3713_v51 = vld [vmem:[#allocation2 + $0x294] sm:$0xf0]  ;;  %v2894_v52 = vld [vmem:[#allocation2 + $0x310] sm:$0xf]  ;;  %v2758_v58 = vld [vmem:[#allocation2 + $0x200] sm:$0xf] }
  0x35   :  { %939 = vmatpush.bf16.msrb.mxu2 %v2935_v59  ;;  %v3729_v53 = vld [vmem:[#allocation2 + $0x314] sm:$0xf0]  ;;  %v2958_v54 = vld [vmem:[#allocation2 + $0x390] sm:$0xf]  ;;  %v3695_v59 = vld [vmem:[#allocation2 + $0x204] sm:$0xf0]  ;;  %v2831_v60 = vor.u32 %v3713_v51, %v2830_v49 }
  0x36   :  { %952 = vmatpush.bf16.msrb.mxu3 %v2999_v63  ;;  %v3745_v55 = vld [vmem:[#allocation2 + $0x394] sm:$0xf0]  ;;  %v2895_v61 = vor.u32 %v3729_v53, %v2894_v52  ;;  %v2822_v62 = vld [vmem:[#allocation2 + $0x280] sm:$0xf]  ;;  %v3711_v63 = vld [vmem:[#allocation2 + $0x284] sm:$0xf0]  ;;  %v2759_v11 = vor.u32 %v3695_v59, %v2758_v58 }
  0x37   :  { %914 = vmatpush.bf16.msrb.mxu0 %v2799_v8  ;;  %v2886_v0 = vld [vmem:[#allocation2 + $0x300] sm:$0xf]  ;;  %v2959_v1 = vor.u32 %v3745_v55, %v2958_v54  ;;  %v3727_v2 = vld [vmem:[#allocation2 + $0x304] sm:$0xf0]  ;;  %v3644_v8 = vld [vmem:[#allocation2 + $0x74] sm:$0xf]  ;;  %v2823_v15 = vor.u32 %v3711_v63, %v2822_v62 }
  0x38   :  { %927 = vmatpush.bf16.msrb.mxu1 %v2863_v9  ;;  %v2950_v3 = vld [vmem:[#allocation2 + $0x380] sm:$0xf]  ;;  %v3743_v4 = vld [vmem:[#allocation2 + $0x384] sm:$0xf0]  ;;  %v2560_v9 = vld [vmem:[#allocation2 + $0x78] sm:$0xf0]  ;;  %v2887_v16 = vor.u32 %v3727_v2, %v2886_v0 }
  0x39   :  { %940 = vmatpush.bf16.msrb.mxu2 %v2927_v10  ;;  %v3660_v10 = vld [vmem:[#allocation2 + $0xf4] sm:$0xf]  ;;  %v2624_v12 = vld [vmem:[#allocation2 + $0xf8] sm:$0xf0]  ;;  %v3642_v24 = vld [vmem:[#allocation2 + $0x64] sm:$0xf] }
  0x3a   :  { %953 = vmatpush.bf16.msrb.mxu3 %v2991_v14  ;;  %v3676_v13 = vld [vmem:[#allocation2 + $0x174] sm:$0xf]  ;;  %v2688_v14 = vld [vmem:[#allocation2 + $0x178] sm:$0xf0]  ;;  %v2627_v25 = vor.u32 %v3660_v10, %v2624_v12  ;;  %v2552_v27 = vld [vmem:[#allocation2 + $0x68] sm:$0xf0] }
  0x3b   :  { %915 = vmatpush.bf16.msrb.mxu0 %v2791_v20  ;;  %v3692_v17 = vld [vmem:[#allocation2 + $0x1f4] sm:$0xf]  ;;  %v2752_v18 = vld [vmem:[#allocation2 + $0x1f8] sm:$0xf0]  ;;  %v2951_v20 = vor.u32 %v3743_v4, %v2950_v3  ;;  %v3658_v28 = vld [vmem:[#allocation2 + $0xe4] sm:$0xf]  ;;  %v2555_v39 = vor.u32 %v3642_v24, %v2552_v27 }
  0x3c   :  { %928 = vmatpush.bf16.msrb.mxu1 %v2855_v21  ;;  %v76_v19 = vld [vmem:[%s4317_s0 + $0x30] sm:$0xff]  ;;  %v2563_v21 = vor.u32 %v3644_v8, %v2560_v9  ;;  %v77_v23 = vld [vmem:[%s4317_s0 + $0x38] sm:$0xff]  ;;  %v75_v29 = vld [vmem:[%s4317_s0 + $0x28] sm:$0xff]  ;;  %v2755_v30 = vor.u32 %v3692_v17, %v2752_v18 }
  0x3d   :  { %941 = vmatpush.bf16.msrb.mxu2 %v2919_v22  ;;  %v74_v22 = vld [vmem:[%s4317_s0 + $0x20] sm:$0xff]  ;;  %v4113_v31 = vpack.c.bf16 %v76_v19, %v76_v19  ;;  %v4117_v36 = vpack.c.bf16 %v77_v23, %v77_v23  ;;  %v4119_v40 = vpack.c.bf16 %v75_v29, %v75_v29  ;;  %v3640_v43 = vld [vmem:[#allocation2 + $0x54] sm:$0xf]  ;;  %v2608_v47 = vld [vmem:[#allocation2 + $0xd8] sm:$0xf0] }
  0x3e   :  { %954 = vmatpush.bf16.msrb.mxu3 %v2983_v26  ;;  %v2691_v26 = vor.u32 %v3676_v13, %v2688_v14  ;;  %v4115_v35 = vpack.c.bf16 %v74_v22, %v74_v22  ;;  %v3690_v37 = vld [vmem:[#allocation2 + $0x1e4] sm:$0xf]  ;;  %v3672_v48 = vld [vmem:[#allocation2 + $0x154] sm:$0xf]  ;;  %v2672_v49 = vld [vmem:[#allocation2 + $0x158] sm:$0xf0] }
  0x3f   :  { %916 = vmatpush.bf16.msrb.mxu0 %v2783_v32  ;;  %v2616_v32 = vld [vmem:[#allocation2 + $0xe8] sm:$0xf0]  ;;  %v2736_v51 = vld [vmem:[#allocation2 + $0x1d8] sm:$0xf0]  ;;  %v2675_v54 = vor.u32 %v3672_v48, %v2672_v49  ;;  %v3638_v55 = vld [vmem:[#allocation2 + $0x44] sm:$0xf] }
  0x40   :  { %929 = vmatpush.bf16.msrb.mxu1 %v2847_v33  ;;  %v3674_v33 = vld [vmem:[#allocation2 + $0x164] sm:$0xf]  ;;  %v2619_v41 = vor.u32 %v3658_v28, %v2616_v32  ;;  %v2664_v62 = vld [vmem:[#allocation2 + $0x148] sm:$0xf0]  ;;  %v3636_v4 = vld [vmem:[#allocation2 + $0x34] sm:$0xf] }
  0x41   :  { %942 = vmatpush.bf16.msrb.mxu2 %v2911_v34  ;;  %v2680_v34 = vld [vmem:[#allocation2 + $0x168] sm:$0xf0]  ;;  %v3654_v58 = vld [vmem:[#allocation2 + $0xc4] sm:$0xf]  ;;  %v2528_v8 = vld [vmem:[#allocation2 + $0x38] sm:$0xf0] }
  0x42   :  { %955 = vmatpush.bf16.msrb.mxu3 %v2975_v38  ;;  %v2744_v38 = vld [vmem:[#allocation2 + $0x1e8] sm:$0xf0]  ;;  %v2683_v42 = vor.u32 %v3674_v33, %v2680_v34  ;;  %v3686_v63 = vld [vmem:[#allocation2 + $0x1c4] sm:$0xf]  ;;  %v3652_v9 = vld [vmem:[#allocation2 + $0xb4] sm:$0xf] }
  0x43   :  { %917 = vmatpush.bf16.msrb.mxu0 %v2775_v44  ;;  %v2544_v44 = vld [vmem:[#allocation2 + $0x58] sm:$0xf0]  ;;  %v2728_v0 = vld [vmem:[#allocation2 + $0x1c8] sm:$0xf0]  ;;  %v3668_v12 = vld [vmem:[#allocation2 + $0x134] sm:$0xf] }
  0x44   :  { %930 = vmatpush.bf16.msrb.mxu1 %v2839_v45  ;;  %v3656_v45 = vld [vmem:[#allocation2 + $0xd4] sm:$0xf]  ;;  %v2547_v52 = vor.u32 %v3640_v43, %v2544_v44  ;;  %v2731_v10 = vor.u32 %v3686_v63, %v2728_v0  ;;  %v2656_v13 = vld [vmem:[#allocation2 + $0x138] sm:$0xf0]  ;;  %v3634_v19 = vld [vmem:[#allocation2 + $0x24] sm:$0xf] }
  0x45   :  { %943 = vmatpush.bf16.msrb.mxu2 %v2903_v46  ;;  %v2747_v46 = vor.u32 %v3690_v37, %v2744_v38  ;;  %v2611_v53 = vor.u32 %v3656_v45, %v2608_v47  ;;  %v3684_v14 = vld [vmem:[#allocation2 + $0x1b4] sm:$0xf]  ;;  %v2659_v18 = vor.u32 %v3668_v12, %v2656_v13  ;;  %v2584_v23 = vld [vmem:[#allocation2 + $0xa8] sm:$0xf0]  ;;  %v3666_v24 = vld [vmem:[#allocation2 + $0x124] sm:$0xf] }
  0x46   :  { %956 = vmatpush.bf16.msrb.mxu3 %v2967_v50  ;;  %v3688_v50 = vld [vmem:[#allocation2 + $0x1d4] sm:$0xf]  ;;  %v2712_v27 = vld [vmem:[#allocation2 + $0x1a8] sm:$0xf0]  ;;  %v2512_v33 = vld [vmem:[#allocation2 + $0x18] sm:$0xf0] }
  0x47   :  { %918 = vmatpush.bf16.msrb.mxu0 %v2767_v56  ;;  %v2536_v56 = vld [vmem:[#allocation2 + $0x48] sm:$0xf0]  ;;  %v2739_v59 = vor.u32 %v3688_v50, %v2736_v51  ;;  %v3632_v32 = vld [vmem:[#allocation2 + $0x14] sm:$0xf]  ;;  %v2576_v38 = vld [vmem:[#allocation2 + $0x98] sm:$0xf0] }
  0x48   :  { %931 = vmatpush.bf16.msrb.mxu1 %v2831_v60  ;;  %v2600_v60 = vld [vmem:[#allocation2 + $0xc8] sm:$0xf0]  ;;  %v3648_v34 = vld [vmem:[#allocation2 + $0x94] sm:$0xf]  ;;  %v2704_v43 = vld [vmem:[#allocation2 + $0x198] sm:$0xf0]  ;;  %v2515_v44 = vor.u32 %v3632_v32, %v2512_v33 }
  0x49   :  { %944 = vmatpush.bf16.msrb.mxu2 %v2895_v61  ;;  %v3670_v61 = vld [vmem:[#allocation2 + $0x144] sm:$0xf]  ;;  %v2603_v2 = vor.u32 %v3654_v58, %v2600_v60  ;;  %v2579_v47 = vor.u32 %v3648_v34, %v2576_v38  ;;  %v2568_v50 = vld [vmem:[#allocation2 + $0x88] sm:$0xf0]  ;;  %v2816_v58 = vld [vmem:[#allocation2 + $0x278] sm:$0xf0] }
  0x4a   :  { %957 = vmatpush.bf16.msrb.mxu3 %v2959_v1  ;;  %v2539_v1 = vor.u32 %v3638_v55, %v2536_v56  ;;  %v2667_v3 = vor.u32 %v3670_v61, %v2664_v62  ;;  %v3630_v45 = vld [vmem:[#allocation2 + $0x4] sm:$0xf]  ;;  %v2696_v55 = vld [vmem:[#allocation2 + $0x188] sm:$0xf0]  ;;  %v3708_v56 = vld [vmem:[#allocation2 + $0x274] sm:$0xf] }
  0x4b   :  { %919 = vmatpush.bf16.msrb.mxu0 %v2759_v11  ;;  %v2592_v11 = vld [vmem:[#allocation2 + $0xb8] sm:$0xf0]  ;;  %v3646_v49 = vld [vmem:[#allocation2 + $0x84] sm:$0xf]  ;;  %v3740_v62 = vld [vmem:[#allocation2 + $0x374] sm:$0xf] }
  0x4c   :  { %932 = vmatpush.bf16.msrb.mxu1 %v2823_v15  ;;  %v2720_v15 = vld [vmem:[#allocation2 + $0x1b8] sm:$0xf0]  ;;  %v2595_v17 = vor.u32 %v3652_v9, %v2592_v11  ;;  %v3662_v51 = vld [vmem:[#allocation2 + $0x104] sm:$0xf]  ;;  %v2571_v0 = vor.u32 %v3646_v49, %v2568_v50  ;;  %v2808_v12 = vld [vmem:[#allocation2 + $0x268] sm:$0xf0] }
  0x4d   :  { %945 = vmatpush.bf16.msrb.mxu2 %v2887_v16  ;;  %v2531_v16 = vor.u32 %v3636_v4, %v2528_v8  ;;  %v2723_v22 = vor.u32 %v3684_v14, %v2720_v15  ;;  %v2880_v61 = vld [vmem:[#allocation2 + $0x2f8] sm:$0xf0]  ;;  %v2819_v8 = vor.u32 %v3708_v56, %v2816_v58  ;;  %v3706_v11 = vld [vmem:[#allocation2 + $0x264] sm:$0xf]  ;;  %v2872_v15 = vld [vmem:[#allocation2 + $0x2e8] sm:$0xf0] }
  0x4e   :  { %958 = vmatpush.bf16.msrb.mxu3 %v2951_v20  ;;  %920 = vmatmul.bf16.vlgmr.msrb.gmra.mxu0 %v4115_v35  ;;  %v2520_v20 = vld [vmem:[#allocation2 + $0x28] sm:$0xf0]  ;;  %v2944_v63 = vld [vmem:[#allocation2 + $0x378] sm:$0xf0]  ;;  %v3722_v13 = vld [vmem:[#allocation2 + $0x2e4] sm:$0xf] }
  0x4f   :  { %964 = vmatpush.bf16.msra.mxu0 %v2563_v21  ;;  %933 = vmatmul.bf16.vlgmr.msrb.gmra.mxu1 %v4119_v40  ;;  %v3650_v21 = vld [vmem:[#allocation2 + $0xa4] sm:$0xf]  ;;  %v2523_v28 = vor.u32 %v3634_v19, %v2520_v20  ;;  %v3000_v19 = vld [vmem:[#allocation2 + $0x3e8] sm:$0xf0]  ;;  %v2811_v20 = vor.u32 %v3706_v11, %v2808_v12  ;;  %v2992_v32 = vld [vmem:[#allocation2 + $0x3d8] sm:$0xf0] }
  0x50   :  { %977 = vmatpush.bf16.msra.mxu1 %v2627_v25  ;;  %946 = vmatmul.bf16.vlgmr.msrb.gmra.mxu2 %v4113_v31  ;;  %v2648_v25 = vld [vmem:[#allocation2 + $0x128] sm:$0xf0]  ;;  %v2587_v29 = vor.u32 %v3650_v21, %v2584_v23  ;;  %v2875_v21 = vor.u32 %v3722_v13, %v2872_v15  ;;  %v3704_v23 = vld [vmem:[#allocation2 + $0x254] sm:$0xf]  ;;  %v3702_v38 = vld [vmem:[#allocation2 + $0x244] sm:$0xf] }
  0x51   :  { %990 = vmatpush.bf16.msra.mxu2 %v2691_v26  ;;  %959 = vmatmul.bf16.vlgmr.msrb.gmra.mxu3 %v4117_v36  ;;  %v3682_v26 = vld [vmem:[#allocation2 + $0x1a4] sm:$0xf]  ;;  %v3716_v49 = vld [vmem:[#allocation2 + $0x2b4] sm:$0xf]  ;;  %v2768_v12 = vld [vmem:[#allocation2 + $0x218] sm:$0xf0] }
  0x52   :  { %1003 = vmatpush.bf16.msra.mxu3 %v2755_v30  ;;  %v2651_v30 = vor.u32 %v3666_v24, %v2648_v25  ;;  %v2715_v37 = vor.u32 %v3682_v26, %v2712_v27  ;;  %v2800_v24 = vld [vmem:[#allocation2 + $0x258] sm:$0xf0]  ;;  %v3720_v25 = vld [vmem:[#allocation2 + $0x2d4] sm:$0xf] }
  0x53   :  { %965 = vmatpush.bf16.msra.mxu0 %v2555_v39  ;;  %v3664_v39 = vld [vmem:[#allocation2 + $0x114] sm:$0xf]  ;;  %v2864_v27 = vld [vmem:[#allocation2 + $0x2d8] sm:$0xf0]  ;;  %v2803_v33 = vor.u32 %v3704_v23, %v2800_v24  ;;  %v3694_v23 = vld [vmem:[#allocation2 + $0x204] sm:$0xf] }
  0x54   :  { %978 = vmatpush.bf16.msra.mxu1 %v2619_v41  ;;  %v2640_v41 = vld [vmem:[#allocation2 + $0x118] sm:$0xf0]  ;;  %v2867_v34 = vor.u32 %v3720_v25, %v2864_v27  ;;  %v3696_v11 = vld [vmem:[#allocation2 + $0x214] sm:$0xf]  ;;  %v2760_v24 = vld [vmem:[#allocation2 + $0x208] sm:$0xf0] }
  0x55   :  { %991 = vmatpush.bf16.msra.mxu2 %v2683_v42  ;;  %v3680_v42 = vld [vmem:[#allocation2 + $0x194] sm:$0xf]  ;;  %v2643_v48 = vor.u32 %v3664_v39, %v2640_v41  ;;  %v2792_v39 = vld [vmem:[#allocation2 + $0x248] sm:$0xf0]  ;;  %v2832_v15 = vld [vmem:[#allocation2 + $0x298] sm:$0xf0] }
  0x56   :  { %1004 = vmatpush.bf16.msra.mxu3 %v2747_v46  ;;  %v2504_v46 = vld [vmem:[#allocation2 + $0x8] sm:$0xf0]  ;;  %v3712_v13 = vld [vmem:[#allocation2 + $0x294] sm:$0xf]  ;;  %v3710_v25 = vld [vmem:[#allocation2 + $0x284] sm:$0xf] }
  0x57   :  { %966 = vmatpush.bf16.msra.mxu0 %v2547_v52  ;;  %v2707_v52 = vor.u32 %v3680_v42, %v2704_v43  ;;  %v2507_v60 = vor.u32 %v3630_v45, %v2504_v46  ;;  %v2856_v42 = vld [vmem:[#allocation2 + $0x2c8] sm:$0xf0]  ;;  %v3734_v43 = vld [vmem:[#allocation2 + $0x344] sm:$0xf] }
  0x58   :  { %979 = vmatpush.bf16.msra.mxu1 %v2611_v53  ;;  %v2632_v53 = vld [vmem:[#allocation2 + $0x108] sm:$0xf0]  ;;  %v3750_v45 = vld [vmem:[#allocation2 + $0x3c4] sm:$0xf] }
  0x59   :  { %992 = vmatpush.bf16.msra.mxu2 %v2675_v54  ;;  %v3678_v54 = vld [vmem:[#allocation2 + $0x184] sm:$0xf]  ;;  %v2824_v27 = vld [vmem:[#allocation2 + $0x288] sm:$0xf0] }
  0x5a   :  { %1005 = vmatpush.bf16.msra.mxu3 %v2739_v59  ;;  %v3724_v59 = vld [vmem:[#allocation2 + $0x2f4] sm:$0xf]  ;;  %v2699_v4 = vor.u32 %v3678_v54, %v2696_v55  ;;  %v2976_v55 = vld [vmem:[#allocation2 + $0x3b8] sm:$0xf0] }
  0x5b   :  { %967 = vmatpush.bf16.msra.mxu0 %v2539_v1  ;;  %v2635_v1 = vor.u32 %v3662_v51, %v2632_v53  ;;  %v2883_v9 = vor.u32 %v3724_v59, %v2880_v61  ;;  %v2848_v51 = vld [vmem:[#allocation2 + $0x2b8] sm:$0xf0]  ;;  %v3748_v54 = vld [vmem:[#allocation2 + $0x3b4] sm:$0xf]  ;;  %v2776_v61 = vld [vmem:[#allocation2 + $0x228] sm:$0xf0] }
  0x5c   :  { %980 = vmatpush.bf16.msra.mxu1 %v2603_v2  ;;  %v3756_v2 = vld [vmem:[#allocation2 + $0x3f4] sm:$0xf]  ;;  %v2912_v53 = vld [vmem:[#allocation2 + $0x338] sm:$0xf0]  ;;  %v2851_v58 = vor.u32 %v3716_v49, %v2848_v51 }
  0x5d   :  { %993 = vmatpush.bf16.msra.mxu2 %v2667_v3  ;;  %v3008_v3 = vld [vmem:[#allocation2 + $0x3f8] sm:$0xf0] }
  0x5e   :  { %1006 = vmatpush.bf16.msra.mxu3 %v2731_v10  ;;  %v2947_v10 = vor.u32 %v3740_v62, %v2944_v63  ;;  %v3011_v14 = vor.u32 %v3756_v2, %v3008_v3  ;;  %v3714_v62 = vld [vmem:[#allocation2 + $0x2a4] sm:$0xf]  ;;  %v2979_v63 = vor.u32 %v3748_v54, %v2976_v55  ;;  %v2904_v2 = vld [vmem:[#allocation2 + $0x328] sm:$0xf0] }
  0x5f   :  { %968 = vmatpush.bf16.msra.mxu0 %v2531_v16  ;;  %v3738_v16 = vld [vmem:[#allocation2 + $0x364] sm:$0xf] }
  0x60   :  { %981 = vmatpush.bf16.msra.mxu1 %v2595_v17  ;;  %v2936_v17 = vld [vmem:[#allocation2 + $0x368] sm:$0xf0]  ;;  %v3746_v3 = vld [vmem:[#allocation2 + $0x3a4] sm:$0xf] }
  0x61   :  { %994 = vmatpush.bf16.msra.mxu2 %v2659_v18  ;;  %v3754_v18 = vld [vmem:[#allocation2 + $0x3e4] sm:$0xf] }
  0x62   :  { %1007 = vmatpush.bf16.msra.mxu3 %v2723_v22  ;;  %v2939_v22 = vor.u32 %v3738_v16, %v2936_v17  ;;  %v3003_v26 = vor.u32 %v3754_v18, %v3000_v19  ;;  %v3728_v16 = vld [vmem:[#allocation2 + $0x314] sm:$0xf]  ;;  %v2896_v17 = vld [vmem:[#allocation2 + $0x318] sm:$0xf0] }
  0x63   :  { %969 = vmatpush.bf16.msra.mxu0 %v2523_v28  ;;  %v3736_v28 = vld [vmem:[#allocation2 + $0x354] sm:$0xf]  ;;  %v2960_v19 = vld [vmem:[#allocation2 + $0x398] sm:$0xf0] }
  0x64   :  { %982 = vmatpush.bf16.msra.mxu1 %v2587_v29  ;;  %v2928_v29 = vld [vmem:[#allocation2 + $0x358] sm:$0xf0]  ;;  %v3744_v18 = vld [vmem:[#allocation2 + $0x394] sm:$0xf] }
  0x65   :  { %995 = vmatpush.bf16.msra.mxu2 %v2651_v30  ;;  %v3752_v30 = vld [vmem:[#allocation2 + $0x3d4] sm:$0xf] }
  0x66   :  { %1008 = vmatpush.bf16.msra.mxu3 %v2715_v37  ;;  %v2931_v37 = vor.u32 %v3736_v28, %v2928_v29  ;;  %v2995_v41 = vor.u32 %v3752_v30, %v2992_v32  ;;  %v3726_v28 = vld [vmem:[#allocation2 + $0x304] sm:$0xf]  ;;  %v2888_v29 = vld [vmem:[#allocation2 + $0x308] sm:$0xf0] }
  0x67   :  { %970 = vmatpush.bf16.msra.mxu0 %v2515_v44  ;;  %v2920_v44 = vld [vmem:[#allocation2 + $0x348] sm:$0xf0]  ;;  %v3742_v30 = vld [vmem:[#allocation2 + $0x384] sm:$0xf] }
  0x68   :  { %983 = vmatpush.bf16.msra.mxu1 %v2579_v47  ;;  %v3700_v47 = vld [vmem:[#allocation2 + $0x234] sm:$0xf]  ;;  %v2952_v32 = vld [vmem:[#allocation2 + $0x388] sm:$0xf0] }
  0x69   :  { %996 = vmatpush.bf16.msra.mxu2 %v2643_v48  ;;  %v2784_v48 = vld [vmem:[#allocation2 + $0x238] sm:$0xf0] }
  0x6a   :  { %1009 = vmatpush.bf16.msra.mxu3 %v2707_v52  ;;  %v3732_v52 = vld [vmem:[#allocation2 + $0x334] sm:$0xf]  ;;  %v2787_v56 = vor.u32 %v3700_v47, %v2784_v48 }
  0x6b   :  { %971 = vmatpush.bf16.msra.mxu0 %v2507_v60  ;;  %v2915_v59 = vor.u32 %v3732_v52, %v2912_v53  ;;  %v3698_v60 = vld [vmem:[#allocation2 + $0x224] sm:$0xf] }
  0x6c   :  { %984 = vmatpush.bf16.msra.mxu1 %v2571_v0  ;;  %v2840_v0 = vld [vmem:[#allocation2 + $0x2a8] sm:$0xf0] }
  0x6d   :  { %997 = vmatpush.bf16.msra.mxu2 %v2635_v1  ;;  %v3730_v1 = vld [vmem:[#allocation2 + $0x324] sm:$0xf] }
  0x6e   :  { %1010 = vmatpush.bf16.msra.mxu3 %v2699_v4  ;;  %972 = vmatmul.bf16.vlgmr.msra.gmra.mxu0 %v4092_v5  ;;  %v2984_v5 = vld [vmem:[#allocation2 + $0x3c8] sm:$0xf0] }
  0x6f   :  { %1016 = vmatpush.bf16.msrb.mxu0 %v2819_v8  ;;  %985 = vmatmul.bf16.vlgmr.msra.gmra.mxu1 %v4096_v7  ;;  %v2923_v7 = vor.u32 %v3734_v43, %v2920_v44  ;;  %v2987_v50 = vor.u32 %v3750_v45, %v2984_v5  ;;  %v2968_v4 = vld [vmem:[#allocation2 + $0x3a8] sm:$0xf0]  ;;  %v2779_v8 = vor.u32 %v3698_v60, %v2776_v61  ;;  %v214_v45 = vld [vmem:[%s4319_s2] sm:$0x3] }
  0x70   :  { %1029 = vmatpush.bf16.msrb.mxu1 %v2883_v9  ;;  %998 = vmatmul.bf16.vlgmr.msra.gmra.mxu2 %v4080_v57  ;;  %v3718_v57 = vld [vmem:[#allocation2 + $0x2c4] sm:$0xf]  ;;  %v2843_v9 = vor.u32 %v3714_v62, %v2840_v0  ;;  %v3759_v44 = vld [vmem:[%s4320_s3 + $0x8] sm:$0xff]  ;;  %v3773_v62 = vld [vmem:[%s4320_s3 + $0x78] sm:$0xff] }
  0x71   :  { %1042 = vmatpush.bf16.msrb.mxu2 %v2947_v10  ;;  %1011 = vmatmul.bf16.vlgmr.msra.gmra.mxu3 %v4094_v6  ;;  %v2795_v6 = vor.u32 %v3702_v38, %v2792_v39  ;;  %v2859_v46 = vor.u32 %v3718_v57, %v2856_v42  ;;  %v2907_v10 = vor.u32 %v3730_v1, %v2904_v2  ;;  %v3765_v39 = vld [vmem:[%s4320_s3 + $0x38] sm:$0xff]  ;;  %v3764_v57 = vld [vmem:[%s4320_s3 + $0x30] sm:$0xff] }
  0x72   :  { %1055 = vmatpush.bf16.msrb.mxu3 %v3011_v14  ;;  %v2971_v14 = vor.u32 %v3746_v3, %v2968_v4  ;;  %v2955_v38 = vor.u32 %v3742_v30, %v2952_v32  ;;  %v3772_v1 = vld [vmem:[%s4320_s3 + $0x70] sm:$0xff] }
  0x73   :  { %1017 = vmatpush.bf16.msrb.mxu0 %v2811_v20  ;;  %v2771_v20 = vor.u32 %v3696_v11, %v2768_v12  ;;  %v3770_v11 = vld [vmem:[%s4320_s3 + $0x60] sm:$0xff]  ;;  %v3769_v12 = vld [vmem:[%s4320_s3 + $0x58] sm:$0xff] }
  0x74   :  { %1030 = vmatpush.bf16.msrb.mxu1 %v2875_v21  ;;  %v2835_v21 = vor.u32 %v3712_v13, %v2832_v15  ;;  %v3768_v13 = vld [vmem:[%s4320_s3 + $0x50] sm:$0xff] }
  0x75   :  { %1043 = vmatpush.bf16.msrb.mxu2 %v2939_v22  ;;  %v2899_v22 = vor.u32 %v3728_v16, %v2896_v17  ;;  %v3767_v16 = vld [vmem:[%s4320_s3 + $0x48] sm:$0xff] }
  0x76   :  { %1056 = vmatpush.bf16.msrb.mxu3 %v3003_v26  ;;  %v2963_v26 = vor.u32 %v3744_v18, %v2960_v19 }
  0x77   :  { %1018 = vmatpush.bf16.msrb.mxu0 %v2803_v33  ;;  %v2763_v33 = vor.u32 %v3694_v23, %v2760_v24  ;;  %v1236_v23 = vld [vmem:[%s4326_s9] sm:$0xff] }
  0x78   :  { %1031 = vmatpush.bf16.msrb.mxu1 %v2867_v34  ;;  %v2827_v34 = vor.u32 %v3710_v25, %v2824_v27  ;;  %1238 = vrot.lane.b32.xlu0 %v1236_v23, %s4010_s17  ;;  %v3838_v23 = vld [vmem:[#allocation4 + $0x1c4] sm:$0xf] }
  0x79   :  { %1044 = vmatpush.bf16.msrb.mxu2 %v2931_v37  ;;  %v2891_v37 = vor.u32 %v3726_v28, %v2888_v29 }
  0x7a   :  { %1057 = vmatpush.bf16.msrb.mxu3 %v2995_v41  ;;  %v3763_v41 = vld [vmem:[%s4320_s3 + $0x28] sm:$0xff] }
  0x7b   :  { %1019 = vmatpush.bf16.msrb.mxu0 %v2795_v6  ;;  %v3758_v6 = vld [vmem:[%s4320_s3] sm:$0xff] }
  0x7c   :  { %1032 = vmatpush.bf16.msrb.mxu1 %v2859_v46  ;;  %v216_v46 = vperm.slane %v214_v45, 0 }
  0x7d   :  { %1045 = vmatpush.bf16.msrb.mxu2 %v2923_v7 }
  0x7e   :  { %1058 = vmatpush.bf16.msrb.mxu3 %v2987_v50 }
  0x7f   :  { %1020 = vmatpush.bf16.msrb.mxu0 %v2787_v56 }
  0x80   :  { %1033 = vmatpush.bf16.msrb.mxu1 %v2851_v58 }
  0x81   :  { %1046 = vmatpush.bf16.msrb.mxu2 %v2915_v59 }
  0x82   :  { %1059 = vmatpush.bf16.msrb.mxu3 %v2979_v63 }
  0x83   :  { %1021 = vmatpush.bf16.msrb.mxu0 %v2779_v8  ;;  %v3771_v8 = vld [vmem:[%s4320_s3 + $0x68] sm:$0xff] }
  0x84   :  { %1034 = vmatpush.bf16.msrb.mxu1 %v2843_v9 }
  0x85   :  { %1047 = vmatpush.bf16.msrb.mxu2 %v2907_v10 }
  0x86   :  { %1060 = vmatpush.bf16.msrb.mxu3 %v2971_v14 }
  0x87   :  { %1022 = vmatpush.bf16.msrb.mxu0 %v2771_v20  ;;  %v3766_v20 = vld [vmem:[%s4320_s3 + $0x40] sm:$0xff] }
  0x88   :  { %1035 = vmatpush.bf16.msrb.mxu1 %v2835_v21 }
  0x89   :  { %1048 = vmatpush.bf16.msrb.mxu2 %v2899_v22  ;;  %v217_v22 = vperm.slane %v214_v45, 1  ;;  %v3102_v45 = vld [vmem:[%s4322_s5 + $0x30] sm:$0xf] }
  0x8a   :  { %1061 = vmatpush.bf16.msrb.mxu3 %v2963_v26 }
  0x8b   :  { %1023 = vmatpush.bf16.msrb.mxu0 %v2763_v33 }
  0x8c   :  { %1036 = vmatpush.bf16.msrb.mxu1 %v2827_v34 }
  0x8d   :  { %1049 = vmatpush.bf16.msrb.mxu2 %v2891_v37 }
  0x8e   :  { %1062 = vmatpush.bf16.msrb.mxu3 %v2955_v38  ;;  %1024 = vmatmul.bf16.vlgmr.msrb.gmra.mxu0 %v4115_v35  ;;  %v3762_v35 = vld [vmem:[%s4320_s3 + $0x20] sm:$0xff] }
  0x8f   :  { %1204 = vmatpush.bf16.msra.mxu0 %v3765_v39  ;;  %1037 = vmatmul.bf16.vlgmr.msrb.gmra.mxu1 %v4119_v40 }
  0x90   :  { %1050 = vmatmul.bf16.vlgmr.msrb.gmra.mxu2 %v4113_v31  ;;  %v3761_v31 = vld [vmem:[%s4320_s3 + $0x18] sm:$0xff]  ;;  %1217 = vmatpush.bf16.msra.mxu1 %v3773_v62 }
  0x91   :  { %1063 = vmatmul.bf16.vlgmr.msrb.gmra.mxu3 %v4117_v36  ;;  %v3760_v36 = vld [vmem:[%s4320_s3 + $0x10] sm:$0xff] }
  0x93   :  { %1205 = vmatpush.bf16.msra.mxu0 %v3764_v57 }
  0x94   :  { %1218 = vmatpush.bf16.msra.mxu1 %v3772_v1 }
  0x97   :  { %1206 = vmatpush.bf16.msra.mxu0 %v3763_v41 }
  0x98   :  { %1219 = vmatpush.bf16.msra.mxu1 %v3771_v8 }
  0x9b   :  { %1207 = vmatpush.bf16.msra.mxu0 %v3762_v35 }
  0x9c   :  { %1220 = vmatpush.bf16.msra.mxu1 %v3770_v11 }
  0x9f   :  { %1208 = vmatpush.bf16.msra.mxu0 %v3761_v31 }
  0xa0   :  { %1221 = vmatpush.bf16.msra.mxu1 %v3769_v12  ;;  %v3078_v12 = vld [vmem:[%s4322_s5] sm:$0xf] }
  0xa3   :  { %1209 = vmatpush.bf16.msra.mxu0 %v3760_v36 }
  0xa4   :  { %1222 = vmatpush.bf16.msra.mxu1 %v3768_v13  ;;  %v3775_v13 = vld [vmem:[%s4322_s5 + $0x4] sm:$0xf0] }
  0xa7   :  { %1210 = vmatpush.bf16.msra.mxu0 %v3759_v44 }
  0xa8   :  { %1223 = vmatpush.bf16.msra.mxu1 %v3767_v16  ;;  %v3080_v16 = vld [vmem:[%s4322_s5 + $0x8] sm:$0xf0] }
  0xab   :  { %v869_v40 = vpop.f32.mrf.mxu0  ;;  %1211 = vmatpush.bf16.msra.mxu0 %v3758_v6  ;;  %v3780_v6 = vld [vmem:[%s4322_s5 + $0x34] sm:$0xf] }
  0xac   :  { %v882_v42 = vpop.f32.mrf.mxu1  ;;  %v870_v49 = vadd.f32 %v869_v40, %v216_v46  ;;  %1224 = vmatpush.bf16.msra.mxu1 %v3766_v20  ;;  %v3592_v20 = vld [vmem:[#allocation4 + $0x3c0] sm:$0xf] }
  0xae   :  { %v883_v51 = vadd.f32 %v882_v42, %v870_v49 }
  0xb3   :  { %v895_v43 = vpop.f32.mrf.mxu2  ;;  %v871_v7 = vpop.f32.mrf.mxu0 }
  0xb4   :  { %v908_v5 = vpop.f32.mrf.mxu3  ;;  %v884_v47 = vpop.f32.mrf.mxu1  ;;  %v896_v52 = vadd.f32 %v895_v43, %v883_v51  ;;  %v3104_v7 = vld [vmem:[%s4322_s5 + $0x38] sm:$0xf0]  ;;  %v3096_v51 = vld [vmem:[%s4322_s5 + $0x28] sm:$0xf0] }
  0xb5   :  { %v3094_v47 = vld [vmem:[%s4322_s5 + $0x20] sm:$0xf]  ;;  %v3107_v49 = vor.u32 %v3780_v6, %v3104_v7  ;;  %v3274_v6 = vld [vmem:[#allocation4 + $0x160] sm:$0xf0] }
  0xb6   :  { %v909_v53 = vadd.f32 %v908_v5, %v896_v52  ;;  %v3781_v5 = vld [vmem:[%s4322_s5 + $0x34] sm:$0xf0]  ;;  %v3530_v7 = vld [vmem:[#allocation4 + $0x360] sm:$0xf0] }
  0xb7   :  { %v3103_v46 = vor.u32 %v3781_v5, %v3102_v45  ;;  %1323 = vmatpush.bf16.msra.mxu3 %v3107_v49  ;;  %v3822_v45 = vld [vmem:[#allocation4 + $0x144] sm:$0xf]  ;;  %v3240_v49 = vld [vmem:[#allocation4 + $0x100] sm:$0xf] }
  0xb9   :  { %1310 = vmatpush.bf16.msra.mxu2 %v3103_v46  ;;  %v3886_v46 = vld [vmem:[#allocation4 + $0x344] sm:$0xf] }
  0xbb   :  { %v897_v48 = vpop.f32.mrf.mxu2 }
  0xbc   :  { %v910_v50 = vpop.f32.mrf.mxu3  ;;  %v3779_v48 = vld [vmem:[%s4322_s5 + $0x24] sm:$0xf0] }
  0xbd   :  { %v3778_v50 = vld [vmem:[%s4322_s5 + $0x24] sm:$0xf]  ;;  %v3095_v52 = vor.u32 %v3779_v48, %v3094_v47  ;;  %v3277_v48 = vor.u32 %v3822_v45, %v3274_v6 }
  0xbe   :  { %v3370_v45 = vld [vmem:[#allocation4 + $0x220] sm:$0xf0] }
  0xbf   :  { %1311 = vmatpush.bf16.msra.mxu2 %v3095_v52  ;;  %v3533_v52 = vor.u32 %v3886_v46, %v3530_v7  ;;  %v3344_v46 = vld [vmem:[#allocation4 + $0x1c8] sm:$0xf] }
  0xc0   :  { %v3843_v7 = vld [vmem:[#allocation4 + $0x1e4] sm:$0xf0] }
  0xcb   :  { %v921_v54 = vpop.f32.mrf.mxu0 }
  0xcc   :  { %v922_v55 = vadd.f32 %v921_v54, %v909_v53  ;;  %v934_v56 = vpop.f32.mrf.mxu1  ;;  %v3099_v53 = vor.u32 %v3778_v50, %v3096_v51  ;;  %v3086_v54 = vld [vmem:[%s4322_s5 + $0x10] sm:$0xf]  ;;  %v3818_v50 = vld [vmem:[#allocation4 + $0x11c] sm:$0xf0] }
  0xcd   :  { %v3496_v51 = vld [vmem:[#allocation4 + $0x300] sm:$0xf] }
  0xce   :  { %v935_v58 = vadd.f32 %v934_v56, %v922_v55  ;;  %v3777_v55 = vld [vmem:[%s4322_s5 + $0x14] sm:$0xf0]  ;;  %v3776_v56 = vld [vmem:[%s4322_s5 + $0x14] sm:$0xf]  ;;  %1324 = vmatpush.bf16.msra.mxu3 %v3099_v53  ;;  %v3882_v53 = vld [vmem:[#allocation4 + $0x31c] sm:$0xf0] }
  0xd3   :  { %v947_v59 = vpop.f32.mrf.mxu2  ;;  %v923_v0 = vpop.f32.mrf.mxu0 }
  0xd4   :  { %v948_v60 = vadd.f32 %v947_v59, %v935_v58  ;;  %v960_v61 = vpop.f32.mrf.mxu3  ;;  %v936_v2 = vpop.f32.mrf.mxu1  ;;  %v3088_v58 = vld [vmem:[%s4322_s5 + $0x18] sm:$0xf0]  ;;  %v3917_v59 = vld [vmem:[%s4321_s4] ss:$0 sm:$0xff] }
  0xd6   :  { %v961_v63 = vadd.f32 %v960_v61, %v948_v60  ;;  %v3087_v60 = vor.u32 %v3777_v55, %v3086_v54  ;;  %v3091_v61 = vor.u32 %v3776_v56, %v3088_v58  ;;  %v3814_v54 = vld [vmem:[#allocation4 + $0x104] sm:$0xf] }
  0xd7   :  { %v3242_v55 = vld [vmem:[#allocation4 + $0x120] sm:$0xf0] }
  0xd8   :  { %v1068_v3 = vmax.f32 %v961_v63, 0.0  ;;  %1312 = vmatpush.bf16.msra.mxu2 %v3087_v60  ;;  %1325 = vmatpush.bf16.msra.mxu3 %v3091_v61  ;;  %v3878_v56 = vld [vmem:[#allocation4 + $0x304] sm:$0xf]  ;;  %v3497_v60 = vor.u32 %v3882_v53, %v3496_v51  ;;  %v3245_v61 = vor.u32 %v3814_v54, %v3242_v55  ;;  %v3346_v51 = vld [vmem:[#allocation4 + $0x1e8] sm:$0xf0] }
  0xd9   :  { %v3498_v58 = vld [vmem:[#allocation4 + $0x320] sm:$0xf0]  ;;  %v3903_v54 = vld [vmem:[#allocation4 + $0x3cc] sm:$0xf] }
  0xda   :  { %v1070_v4 = vpack.c.bf16 %v1068_v3, %v1068_v3  ;;  %v3602_v55 = vld [vmem:[#allocation4 + $0x3e8] sm:$0xf0] }
  0xdb   :  { %v949_v9 = vpop.f32.mrf.mxu2 }
  0xdc   :  { %1212 = vmatmul.bf16.vlgmr.msra.gmra.mxu0 %v1070_v4  ;;  %v962_v10 = vpop.f32.mrf.mxu3 }
  0xea   :  { %v1239_v9 = vpop.permute.xlu0 %1238 }
  0xeb   :  { %v973_v14 = vpop.f32.mrf.mxu0 }
  0xec   :  { %v986_v15 = vpop.f32.mrf.mxu1  ;;  %v974_v26 = vadd.f32 %v973_v14, %v217_v22  ;;  %v3774_v14 = vld [vmem:[%s4322_s5 + $0x4] sm:$0xf]  ;;  %v3906_v22 = vld [vmem:[#allocation4 + $0x3dc] sm:$0xf0] }
  0xee   :  { %v987_v27 = vadd.f32 %v986_v15, %v974_v26  ;;  %v3079_v15 = vor.u32 %v3775_v13, %v3078_v12 }
  0xf0   :  { %1313 = vmatpush.bf16.msra.mxu2 %v3079_v15  ;;  %v3802_v15 = vld [vmem:[#allocation4 + $0x9c] sm:$0xf0] }
  0xf3   :  { %v999_v17 = vpop.f32.mrf.mxu2  ;;  %v975_v19 = vpop.f32.mrf.mxu0 }
  0xf4   :  { %v1012_v18 = vpop.f32.mrf.mxu3  ;;  %v988_v21 = vpop.f32.mrf.mxu1  ;;  %v1000_v28 = vadd.f32 %v999_v17, %v987_v27  ;;  %v3083_v17 = vor.u32 %v3774_v14, %v3080_v16  ;;  %v3842_v19 = vld [vmem:[#allocation4 + $0x1dc] sm:$0xf0]  ;;  %v3902_v27 = vld [vmem:[#allocation4 + $0x3c4] sm:$0xf] }
  0xf5   :  { %v3176_v14 = vld [vmem:[#allocation4 + $0x80] sm:$0xf] }
  0xf6   :  { %v1013_v29 = vadd.f32 %v1012_v18, %v1000_v28  ;;  %1326 = vmatpush.bf16.msra.mxu3 %v3083_v17  ;;  %v3336_v18 = vld [vmem:[#allocation4 + $0x1c0] sm:$0xf]  ;;  %v3594_v28 = vld [vmem:[#allocation4 + $0x3e0] sm:$0xf0] }
  0xf7   :  { %v3337_v21 = vor.u32 %v3842_v19, %v3336_v18  ;;  %v3432_v16 = vld [vmem:[#allocation4 + $0x280] sm:$0xf]  ;;  %v3798_v19 = vld [vmem:[#allocation4 + $0x84] sm:$0xf] }
  0xf8   :  { %v3866_v18 = vld [vmem:[#allocation4 + $0x29c] sm:$0xf0] }
  0xf9   :  { %2122 = vmatpush.bf16.msrb.mxu2 %v3337_v21  ;;  %v3862_v21 = vld [vmem:[#allocation4 + $0x284] sm:$0xf] }
  0xfb   :  { %v1001_v24 = vpop.f32.mrf.mxu2 }
  0xfc   :  { %v1014_v25 = vpop.f32.mrf.mxu3  ;;  %v3338_v24 = vld [vmem:[#allocation4 + $0x1e0] sm:$0xf0] }
  0xfd   :  { %v3593_v25 = vor.u32 %v3906_v22, %v3592_v20  ;;  %v3341_v26 = vor.u32 %v3838_v23, %v3338_v24  ;;  %v3178_v20 = vld [vmem:[#allocation4 + $0xa0] sm:$0xf0]  ;;  %v3177_v23 = vor.u32 %v3802_v15, %v3176_v14  ;;  %v3433_v24 = vor.u32 %v3866_v18, %v3432_v16  ;;  %v3827_v14 = vld [vmem:[#allocation4 + $0x164] sm:$0xf0]  ;;  %v3823_v18 = vld [vmem:[#allocation4 + $0x14c] sm:$0xf] }
  0xfe   :  { %v3434_v22 = vld [vmem:[#allocation4 + $0x2a0] sm:$0xf0]  ;;  %v3536_v15 = vld [vmem:[#allocation4 + $0x348] sm:$0xf] }
  0xff   :  { %2135 = vmatpush.bf16.msrb.mxu3 %v3593_v25  ;;  %2148 = vmatpush.bf16.msrb.mxu0 %v3341_v26  ;;  %v3181_v25 = vor.u32 %v3798_v19, %v3178_v20  ;;  %v3144_v26 = vld [vmem:[#allocation4 + $0x40] sm:$0xf]  ;;  %v3282_v19 = vld [vmem:[#allocation4 + $0x168] sm:$0xf0] }
 0x100   :  { %v3887_v20 = vld [vmem:[#allocation4 + $0x34c] sm:$0xf] }
 0x10b   :  { %v1025_v30 = vpop.f32.mrf.mxu0 }
 0x10c   :  { %v1038_v32 = vpop.f32.mrf.mxu1  ;;  %v1026_v33 = vadd.f32 %v1025_v30, %v1013_v29  ;;  %v3304_v29 = vld [vmem:[#allocation4 + $0x180] sm:$0xf]  ;;  %v3597_v30 = vor.u32 %v3902_v27, %v3594_v28 }
 0x10d   :  { %v3794_v27 = vld [vmem:[#allocation4 + $0x5c] sm:$0xf0] }
 0x10e   :  { %v1039_v34 = vadd.f32 %v1038_v32, %v1026_v33  ;;  %v3834_v32 = vld [vmem:[#allocation4 + $0x19c] sm:$0xf0]  ;;  %2161 = vmatpush.bf16.msrb.mxu1 %v3597_v30 }
 0x10f   :  { %v3560_v33 = vld [vmem:[#allocation4 + $0x380] sm:$0xf] }
 0x110   :  { %v3400_v28 = vld [vmem:[#allocation4 + $0x240] sm:$0xf] }
 0x111   :  { %v3858_v30 = vld [vmem:[#allocation4 + $0x25c] sm:$0xf0] }
 0x113   :  { %v1051_v37 = vpop.f32.mrf.mxu2  ;;  %v1027_v57 = vpop.f32.mrf.mxu0 }
 0x114   :  { %v1052_v38 = vadd.f32 %v1051_v37, %v1039_v34  ;;  %v1064_v39 = vpop.f32.mrf.mxu3  ;;  %v1040_v41 = vpop.f32.mrf.mxu1  ;;  %v3898_v34 = vld [vmem:[#allocation4 + $0x39c] sm:$0xf0]  ;;  %v3305_v37 = vor.u32 %v3834_v32, %v3304_v29  ;;  %v3306_v57 = vld [vmem:[#allocation4 + $0x1a0] sm:$0xf0]  ;;  %v3437_v29 = vor.u32 %v3862_v21, %v3434_v22  ;;  %v3538_v21 = vld [vmem:[#allocation4 + $0x368] sm:$0xf0] }
 0x115   :  { %v3894_v41 = vld [vmem:[#allocation4 + $0x384] sm:$0xf] }
 0x116   :  { %v1065_v35 = vadd.f32 %v1064_v39, %v1052_v38  ;;  %v3561_v38 = vor.u32 %v3898_v34, %v3560_v33  ;;  %v3830_v39 = vld [vmem:[#allocation4 + $0x184] sm:$0xf]  ;;  %2123 = vmatpush.bf16.msrb.mxu2 %v3305_v37 }
 0x117   :  { %v3790_v32 = vld [vmem:[#allocation4 + $0x44] sm:$0xf] }
 0x118   :  { %v1069_v31 = vmax.f32 %v1065_v35, 0.0  ;;  %v3309_v35 = vor.u32 %v3830_v39, %v3306_v57  ;;  %2136 = vmatpush.bf16.msrb.mxu3 %v3561_v38  ;;  %v3146_v33 = vld [vmem:[#allocation4 + $0x60] sm:$0xf0]  ;;  %v3145_v38 = vor.u32 %v3794_v27, %v3144_v26  ;;  %v3401_v39 = vor.u32 %v3858_v30, %v3400_v28  ;;  %v3819_v26 = vld [vmem:[#allocation4 + $0x124] sm:$0xf0] }
 0x119   :  { %v3854_v34 = vld [vmem:[#allocation4 + $0x244] sm:$0xf]  ;;  %v3149_v57 = vor.u32 %v3790_v32, %v3146_v33  ;;  %v3504_v27 = vld [vmem:[#allocation4 + $0x308] sm:$0xf]  ;;  %v3541_v28 = vor.u32 %v3887_v20, %v3538_v21  ;;  %v3815_v30 = vld [vmem:[#allocation4 + $0x10c] sm:$0xf] }
 0x11a   :  { %v1071_v36 = vpack.c.bf16 %v1069_v31, %v1069_v31  ;;  %v3562_v31 = vld [vmem:[#allocation4 + $0x3a0] sm:$0xf0]  ;;  %2149 = vmatpush.bf16.msrb.mxu0 %v3309_v35  ;;  %v3786_v35 = vld [vmem:[#allocation4 + $0x1c] sm:$0xf0]  ;;  %v3250_v32 = vld [vmem:[#allocation4 + $0x128] sm:$0xf0] }
 0x11b   :  { %v1053_v40 = vpop.f32.mrf.mxu2  ;;  %v3402_v37 = vld [vmem:[#allocation4 + $0x260] sm:$0xf0]  ;;  %v3879_v33 = vld [vmem:[#allocation4 + $0x30c] sm:$0xf] }
 0x11c   :  { %v1066_v42 = vpop.f32.mrf.mxu3  ;;  %1225 = vmatmul.bf16.vlgmr.msra.gmra.mxu1 %v1071_v36  ;;  %v3272_v36 = vld [vmem:[#allocation4 + $0x140] sm:$0xf]  ;;  %v3378_v20 = vld [vmem:[#allocation4 + $0x228] sm:$0xf0] }
 0x11d   :  { %v3826_v40 = vld [vmem:[#allocation4 + $0x15c] sm:$0xf0]  ;;  %v3565_v42 = vor.u32 %v3894_v41, %v3562_v31  ;;  %v3405_v31 = vor.u32 %v3854_v34, %v3402_v37  ;;  %v3506_v34 = vld [vmem:[#allocation4 + $0x328] sm:$0xf0] }
 0x11e   :  { %v3273_v5 = vor.u32 %v3826_v40, %v3272_v36  ;;  %2150 = vmatpush.bf16.msrb.mxu0 %v3277_v48  ;;  %v3112_v41 = vld [vmem:[#allocation4] sm:$0xf] }
 0x11f   :  { %2162 = vmatpush.bf16.msrb.mxu1 %v3565_v42  ;;  %v3368_v36 = vld [vmem:[#allocation4 + $0x200] sm:$0xf]  ;;  %v3782_v42 = vld [vmem:[#allocation4 + $0x4] sm:$0xf]  ;;  %v3113_v6 = vor.u32 %v3786_v35, %v3112_v41  ;;  %v3811_v41 = vld [vmem:[#allocation4 + $0xe4] sm:$0xf0] }
 0x120   :  { %2124 = vmatpush.bf16.msrb.mxu2 %v3273_v5  ;;  %v3850_v40 = vld [vmem:[#allocation4 + $0x21c] sm:$0xf0]  ;;  %v3472_v35 = vld [vmem:[#allocation4 + $0x2c8] sm:$0xf] }
 0x122   :  { %2151 = vmatpush.bf16.msrb.mxu0 %v3245_v61 }
 0x123   :  { %2163 = vmatpush.bf16.msrb.mxu1 %v3533_v52  ;;  %v3369_v52 = vor.u32 %v3850_v40, %v3368_v36  ;;  %v3875_v36 = vld [vmem:[#allocation4 + $0x2e4] sm:$0xf0]  ;;  %v3807_v40 = vld [vmem:[#allocation4 + $0xcc] sm:$0xf] }
 0x159   :  { %v1213_v43 = vpop.f32.mrf.mxu0 }
 0x15a   :  { %v1214_v62 = vadd.f32 %v3917_v59, %v1213_v43  ;;  %v3528_v43 = vld [vmem:[#allocation4 + $0x340] sm:$0xf]  ;;  %v3241_v59 = vor.u32 %v3818_v50, %v3240_v49  ;;  %v3907_v49 = vld [vmem:[#allocation4 + $0x3e4] sm:$0xf0]  ;;  %v3839_v50 = vld [vmem:[#allocation4 + $0x1cc] sm:$0xf] }
 0x15b   :  { %v3349_v61 = vor.u32 %v3839_v50, %v3346_v51  ;;  %v3799_v50 = vld [vmem:[#allocation4 + $0x8c] sm:$0xf] }
 0x15c   :  { %2125 = vmatpush.bf16.msrb.mxu2 %v3241_v59  ;;  %v3345_v59 = vor.u32 %v3843_v7, %v3344_v46  ;;  %v3184_v46 = vld [vmem:[#allocation4 + $0x88] sm:$0xf]  ;;  %v3186_v51 = vld [vmem:[#allocation4 + $0xa8] sm:$0xf0] }
 0x15d   :  { %v3803_v7 = vld [vmem:[#allocation4 + $0xa4] sm:$0xf0] }
 0x161   :  { %v1215_v44 = vpop.f32.mrf.mxu0 }
 0x162   :  { %v3890_v44 = vld [vmem:[#allocation4 + $0x35c] sm:$0xf0] }
 0x163   :  { %v3529_v47 = vor.u32 %v3890_v44, %v3528_v43  ;;  %v3114_v43 = vld [vmem:[#allocation4 + $0x20] sm:$0xf0] }
 0x164   :  { %v3846_v44 = vld [vmem:[#allocation4 + $0x204] sm:$0xf]  ;;  %v3117_v53 = vor.u32 %v3782_v42, %v3114_v43  ;;  %v3218_v42 = vld [vmem:[#allocation4 + $0xe8] sm:$0xf0] }
 0x165   :  { %2137 = vmatpush.bf16.msrb.mxu3 %v3529_v47  ;;  %v3600_v47 = vld [vmem:[#allocation4 + $0x3c8] sm:$0xf]  ;;  %v3871_v43 = vld [vmem:[#allocation4 + $0x2cc] sm:$0xf] }
 0x169   :  { %2138 = vmatpush.bf16.msrb.mxu3 %v3497_v60  ;;  %v3601_v60 = vor.u32 %v3907_v49, %v3600_v47  ;;  %v3440_v47 = vld [vmem:[#allocation4 + $0x288] sm:$0xf] }
 0x16a   :  { %v3867_v49 = vld [vmem:[#allocation4 + $0x2a4] sm:$0xf0] }
 0x199   :  { %v1226_v63 = vpop.f32.mrf.mxu1 }
 0x19a   :  { %v4227_v0 = vadd.f32 %v1226_v63, %v1214_v62  ;;  %v3208_v62 = vld [vmem:[#allocation4 + $0xc0] sm:$0xf] }
 0x19b   :  { %v3810_v63 = vld [vmem:[#allocation4 + $0xdc] sm:$0xf0] }
 0x19c   :  { %1230 = vst [vmem:[%s4328_s11] sm:$0xff] %v4227_v0  ;;  %v1231_v1 = vmax.f32 %v4227_v0, -30.0 }
 0x19e   :  { %v1232_v2 = vmin.f32 %v1231_v1, 20.0  ;;  %v3464_v1 = vld [vmem:[#allocation4 + $0x2c0] sm:$0xf] }
 0x1a0   :  { %v1233_v3 = vmul.f32 0.5, %v1232_v2  ;;  %v3501_v2 = vor.u32 %v3878_v56, %v3498_v58  ;;  %v3373_v58 = vor.u32 %v3846_v44, %v3370_v45  ;;  %v3474_v44 = vld [vmem:[#allocation4 + $0x2e8] sm:$0xf0] }
 0x1a1   :  { %v1228_v4 = vpop.f32.mrf.mxu1 }
 0x1a2   :  { %v1234_v8 = vmul.f32 1.442695, %v1233_v3  ;;  %v3874_v3 = vld [vmem:[#allocation4 + $0x2dc] sm:$0xf0]  ;;  %v3806_v4 = vld [vmem:[#allocation4 + $0xc4] sm:$0xf]  ;;  %2164 = vmatpush.bf16.msrb.mxu1 %v3501_v2 }
 0x1a3   :  { %v3465_v12 = vor.u32 %v3874_v3, %v3464_v1  ;;  %v3605_v1 = vor.u32 %v3903_v54, %v3602_v55  ;;  %v3899_v2 = vld [vmem:[#allocation4 + $0x3a4] sm:$0xf0]  ;;  %v3831_v3 = vld [vmem:[#allocation4 + $0x18c] sm:$0xf]  ;;  %v3185_v54 = vor.u32 %v3803_v7, %v3184_v46  ;;  %v3441_v55 = vor.u32 %v3867_v49, %v3440_v47  ;;  %v3832_v46 = vld [vmem:[#allocation4 + $0x194] sm:$0xf] }
 0x1a4   :  { %3918 = vpow2.f32 %v1234_v8  ;;  %v3210_v8 = vld [vmem:[#allocation4 + $0xe0] sm:$0xf0]  ;;  %v3322_v7 = vld [vmem:[#allocation4 + $0x1b0] sm:$0xf0] }
 0x1a5   :  { %v3213_v13 = vor.u32 %v3806_v4, %v3210_v8  ;;  %2139 = vmatpush.bf16.msrb.mxu3 %v3465_v12  ;;  %v3314_v4 = vld [vmem:[#allocation4 + $0x1a8] sm:$0xf0]  ;;  %v3896_v47 = vld [vmem:[#allocation4 + $0x394] sm:$0xf] }
 0x1a6   :  { %v3895_v8 = vld [vmem:[#allocation4 + $0x38c] sm:$0xf]  ;;  %v3317_v12 = vor.u32 %v3831_v3, %v3314_v4 }
 0x1a7   :  { %2152 = vmatpush.bf16.msrb.mxu0 %v3213_v13  ;;  %v3280_v13 = vld [vmem:[#allocation4 + $0x148] sm:$0xf]  ;;  %v3855_v3 = vld [vmem:[#allocation4 + $0x24c] sm:$0xf] }
 0x1a8   :  { %v3281_v22 = vor.u32 %v3827_v14, %v3280_v13  ;;  %v3410_v4 = vld [vmem:[#allocation4 + $0x268] sm:$0xf0]  ;;  %v3851_v14 = vld [vmem:[#allocation4 + $0x224] sm:$0xf0] }
 0x1a9   :  { %2140 = vmatpush.bf16.msrb.mxu3 %v3433_v24  ;;  %v3285_v24 = vor.u32 %v3823_v18, %v3282_v19  ;;  %v3847_v19 = vld [vmem:[#allocation4 + $0x20c] sm:$0xf] }
 0x1aa   :  { %v3919_v10 = vpop.eup %3918  ;;  %v3381_v21 = vor.u32 %v3847_v19, %v3378_v20 }
 0x1ab   :  { %v1241_v11 = vmul.f32 %v3919_v10, %v1239_v9  ;;  %v3870_v9 = vld [vmem:[#allocation4 + $0x2c4] sm:$0xf]  ;;  %2153 = vmatpush.bf16.msrb.mxu0 %v3181_v25  ;;  %v3248_v25 = vld [vmem:[#allocation4 + $0x108] sm:$0xf] }
 0x1ac   :  { %v3466_v10 = vld [vmem:[#allocation4 + $0x2e0] sm:$0xf0]  ;;  %v3249_v37 = vor.u32 %v3819_v26, %v3248_v25 }
 0x1ad   :  { %1243 = vrot.lane.b32.xlu0 %v1241_v11, %s4010_s17  ;;  %v3209_v11 = vor.u32 %v3810_v63, %v3208_v62  ;;  %v3469_v17 = vor.u32 %v3870_v9, %v3466_v10  ;;  %2141 = vmatpush.bf16.msrb.mxu3 %v3401_v39  ;;  %v3312_v62 = vld [vmem:[#allocation4 + $0x188] sm:$0xf]  ;;  %v3570_v9 = vld [vmem:[#allocation4 + $0x3a8] sm:$0xf0]  ;;  %v3253_v39 = vor.u32 %v3815_v30, %v3250_v32  ;;  %v3844_v30 = vld [vmem:[#allocation4 + $0x1ec] sm:$0xf0] }
 0x1ae   :  { %v3835_v63 = vld [vmem:[#allocation4 + $0x1a4] sm:$0xf0]  ;;  %v3573_v16 = vor.u32 %v3895_v8, %v3570_v9  ;;  %v3413_v9 = vor.u32 %v3855_v3, %v3410_v4  ;;  %v3608_v32 = vld [vmem:[#allocation4 + $0x3d0] sm:$0xf] }
 0x1af   :  { %2126 = vmatpush.bf16.msrb.mxu2 %v3209_v11  ;;  %2165 = vmatpush.bf16.msrb.mxu1 %v3469_v17  ;;  %v3313_v10 = vor.u32 %v3835_v63, %v3312_v62  ;;  %v3891_v17 = vld [vmem:[#allocation4 + $0x364] sm:$0xf0]  ;;  %v3820_v3 = vld [vmem:[#allocation4 + $0x12c] sm:$0xf0] }
 0x1b0   :  { %2154 = vmatpush.bf16.msrb.mxu0 %v3149_v57  ;;  %v3216_v57 = vld [vmem:[#allocation4 + $0xc8] sm:$0xf] }
 0x1b1   :  { %2142 = vmatpush.bf16.msrb.mxu3 %v3369_v52  ;;  %v3217_v45 = vor.u32 %v3811_v41, %v3216_v57  ;;  %v3863_v52 = vld [vmem:[#allocation4 + $0x28c] sm:$0xf]  ;;  %v3408_v62 = vld [vmem:[#allocation4 + $0x248] sm:$0xf]  ;;  %v3904_v57 = vld [vmem:[#allocation4 + $0x3d4] sm:$0xf] }
 0x1b2   :  { %v3859_v63 = vld [vmem:[#allocation4 + $0x264] sm:$0xf0]  ;;  %v3610_v41 = vld [vmem:[#allocation4 + $0x3f0] sm:$0xf0] }
 0x1b3   :  { %2127 = vmatpush.bf16.msrb.mxu2 %v3177_v23  ;;  %2166 = vmatpush.bf16.msrb.mxu1 %v3437_v29  ;;  %v3537_v23 = vor.u32 %v3891_v17, %v3536_v15  ;;  %v3883_v29 = vld [vmem:[#allocation4 + $0x324] sm:$0xf0]  ;;  %v3783_v15 = vld [vmem:[#allocation4 + $0xc] sm:$0xf] }
 0x1b4   :  { %2155 = vmatpush.bf16.msrb.mxu0 %v3117_v53  ;;  %v3442_v53 = vld [vmem:[#allocation4 + $0x2a8] sm:$0xf0] }
 0x1b7   :  { %2128 = vmatpush.bf16.msrb.mxu2 %v3145_v38  ;;  %2167 = vmatpush.bf16.msrb.mxu1 %v3405_v31  ;;  %v3505_v38 = vor.u32 %v3883_v29, %v3504_v27  ;;  %v3509_v31 = vor.u32 %v3879_v33, %v3506_v34  ;;  %v3352_v29 = vld [vmem:[#allocation4 + $0x1d0] sm:$0xf]  ;;  %v3840_v34 = vld [vmem:[#allocation4 + $0x1d4] sm:$0xf] }
 0x1b8   :  { %2200 = vmatpush.bf16.msra.mxu0 %v3349_v61  ;;  %v3908_v33 = vld [vmem:[#allocation4 + $0x3ec] sm:$0xf0] }
 0x1bb   :  { %2129 = vmatpush.bf16.msrb.mxu2 %v3113_v6  ;;  %2168 = vmatpush.bf16.msrb.mxu1 %v3373_v58  ;;  %v3221_v6 = vor.u32 %v3807_v40, %v3218_v42  ;;  %v3445_v58 = vor.u32 %v3863_v52, %v3442_v53  ;;  %v3609_v40 = vor.u32 %v3908_v33, %v3608_v32  ;;  %v3320_v42 = vld [vmem:[#allocation4 + $0x190] sm:$0xf] }
 0x1bc   :  { %2201 = vmatpush.bf16.msra.mxu0 %v3317_v12  ;;  %v3376_v12 = vld [vmem:[#allocation4 + $0x208] sm:$0xf]  ;;  %v3288_v53 = vld [vmem:[#allocation4 + $0x150] sm:$0xf] }
 0x1bd   :  { %v3377_v17 = vor.u32 %v3851_v14, %v3376_v12  ;;  %v3258_v12 = vld [vmem:[#allocation4 + $0x130] sm:$0xf0] }
 0x1be   :  { %v3514_v14 = vld [vmem:[#allocation4 + $0x330] sm:$0xf0] }
 0x1bf   :  { %2213 = vmatpush.bf16.msra.mxu1 %v3605_v1  ;;  %v3409_v1 = vor.u32 %v3859_v63, %v3408_v62  ;;  %v3888_v62 = vld [vmem:[#allocation4 + $0x354] sm:$0xf] }
 0x1c0   :  { %2202 = vmatpush.bf16.msra.mxu0 %v3285_v24  ;;  %v3546_v63 = vld [vmem:[#allocation4 + $0x370] sm:$0xf0] }
 0x1c3   :  { %2214 = vmatpush.bf16.msra.mxu1 %v3573_v16  ;;  %v3122_v16 = vld [vmem:[#allocation4 + $0x28] sm:$0xf0] }
 0x1c4   :  { %2203 = vmatpush.bf16.msra.mxu0 %v3253_v39  ;;  %v3125_v18 = vor.u32 %v3783_v15, %v3122_v16 }
 0x1c7   :  { %2215 = vmatpush.bf16.msra.mxu1 %v3541_v28 }
 0x1c8   :  { %2204 = vmatpush.bf16.msra.mxu0 %v3221_v6  ;;  %v3900_v6 = vld [vmem:[#allocation4 + $0x3ac] sm:$0xf0] }
 0x1cb   :  { %2216 = vmatpush.bf16.msra.mxu1 %v3509_v31 }
 0x21f   :  { %v1244_v5 = vpop.permute.xlu0 %1243 }
 0x220   :  { %v1246_v48 = vadd.f32 %v1244_v5, %v4227_v0  ;;  %v3568_v0 = vld [vmem:[#allocation4 + $0x388] sm:$0xf]  ;;  %v3473_v5 = vor.u32 %v3875_v36, %v3472_v35  ;;  %v3353_v36 = vor.u32 %v3844_v30, %v3352_v29  ;;  %v3192_v29 = vld [vmem:[#allocation4 + $0x90] sm:$0xf] }
 0x221   :  { %v3569_v11 = vor.u32 %v3899_v2, %v3568_v0  ;;  %v3791_v0 = vld [vmem:[#allocation4 + $0x4c] sm:$0xf]  ;;  %v3804_v30 = vld [vmem:[#allocation4 + $0xac] sm:$0xf0] }
 0x222   :  { %v1247_v56 = vpack.c.bf16 %v1246_v48, %v1246_v48  ;;  %v3477_v48 = vor.u32 %v3871_v43, %v3474_v44  ;;  %v3154_v2 = vld [vmem:[#allocation4 + $0x68] sm:$0xf0]  ;;  %v3836_v43 = vld [vmem:[#allocation4 + $0x1ac] sm:$0xf0] }
 0x223   :  { %v3157_v8 = vor.u32 %v3791_v0, %v3154_v2  ;;  %v3256_v2 = vld [vmem:[#allocation4 + $0x110] sm:$0xf] }
 0x224   :  { %3108 = vmatmul.msk.bf16.vlgmr.msra.gmra.mxu2 %vm1302_vm0, %v1247_v56  ;;  %3109 = vmatmul.msk.bf16.vlgmr.msra.gmra.mxu3 %vm1302_vm0, %v1247_v56  ;;  %v3189_v56 = vor.u32 %v3799_v50, %v3186_v51  ;;  %v3321_v51 = vor.u32 %v3836_v43, %v3320_v42  ;;  %v3257_v15 = vor.u32 %v3820_v3, %v3256_v2  ;;  %v3160_v42 = vld [vmem:[#allocation4 + $0x50] sm:$0xf]  ;;  %v3841_v2 = vld [vmem:[#allocation4 + $0x1dc] sm:$0xf] }
 0x225   :  { %2174 = vmatpush.bf16.msra.mxu2 %v3345_v59  ;;  %2187 = vmatpush.bf16.msra.mxu3 %v3601_v60  ;;  %v3152_v59 = vld [vmem:[#allocation4 + $0x48] sm:$0xf]  ;;  %v3796_v43 = vld [vmem:[#allocation4 + $0x6c] sm:$0xf0] }
 0x226   :  { %2217 = vmatpush.bf16.msra.mxu1 %v3477_v48  ;;  %2205 = vmatpush.bf16.msra.mxu0 %v3189_v56  ;;  %v3795_v60 = vld [vmem:[#allocation4 + $0x64] sm:$0xf0]  ;;  %v3578_v48 = vld [vmem:[#allocation4 + $0x3b0] sm:$0xf0] }
 0x227   :  { %v3153_v61 = vor.u32 %v3795_v60, %v3152_v59  ;;  %v3581_v56 = vor.u32 %v3896_v47, %v3578_v48  ;;  %v3892_v59 = vld [vmem:[#allocation4 + $0x36c] sm:$0xf0]  ;;  %v3824_v60 = vld [vmem:[#allocation4 + $0x154] sm:$0xf] }
 0x228   :  { %v3856_v47 = vld [vmem:[#allocation4 + $0x254] sm:$0xf] }
 0x229   :  { %2175 = vmatpush.bf16.msra.mxu2 %v3313_v10  ;;  %2188 = vmatpush.bf16.msra.mxu3 %v3569_v11  ;;  %v3120_v10 = vld [vmem:[#allocation4 + $0x8] sm:$0xf]  ;;  %v3418_v48 = vld [vmem:[#allocation4 + $0x270] sm:$0xf0] }
 0x22a   :  { %2218 = vmatpush.bf16.msra.mxu1 %v3445_v58  ;;  %v3787_v11 = vld [vmem:[#allocation4 + $0x24] sm:$0xf0]  ;;  %2206 = vmatpush.bf16.msra.mxu0 %v3157_v8  ;;  %v3544_v58 = vld [vmem:[#allocation4 + $0x350] sm:$0xf]  ;;  %v3549_v8 = vor.u32 %v3888_v62, %v3546_v63  ;;  %v3360_v62 = vld [vmem:[#allocation4 + $0x1d8] sm:$0xf] }
 0x22b   :  { %v3121_v13 = vor.u32 %v3787_v11, %v3120_v10  ;;  %v3884_v10 = vld [vmem:[#allocation4 + $0x32c] sm:$0xf0]  ;;  %v3816_v11 = vld [vmem:[#allocation4 + $0x114] sm:$0xf]  ;;  %v3845_v63 = vld [vmem:[#allocation4 + $0x1f4] sm:$0xf0] }
 0x22c   :  { %v3261_v19 = vor.u32 %v3816_v11, %v3258_v12 }
 0x22d   :  { %2176 = vmatpush.bf16.msra.mxu2 %v3281_v22  ;;  %2189 = vmatpush.bf16.msra.mxu3 %v3537_v23  ;;  %v1256_v22 = vld [vmem:[%s4323_s6] sm:$0x3] }
 0x22e   :  { %2219 = vmatpush.bf16.msra.mxu1 %v3413_v9  ;;  %2207 = vmatpush.bf16.msra.mxu0 %v3125_v18  ;;  %v1258_v23 = vperm.slane %v1256_v22, 0  ;;  %v1259_v24 = vperm.slane %v1256_v22, 1  ;;  %v3512_v9 = vld [vmem:[#allocation4 + $0x310] sm:$0xf] }
 0x22f   :  { %v3513_v16 = vor.u32 %v3884_v10, %v3512_v9  ;;  %v3812_v18 = vld [vmem:[#allocation4 + $0xec] sm:$0xf0]  ;;  %v3905_v9 = vld [vmem:[#allocation4 + $0x3dc] sm:$0xf] }
 0x230   :  { %v3876_v22 = vld [vmem:[#allocation4 + $0x2ec] sm:$0xf0]  ;;  %v3618_v10 = vld [vmem:[#allocation4 + $0x3f8] sm:$0xf0] }
 0x231   :  { %2177 = vmatpush.bf16.msra.mxu2 %v3249_v37  ;;  %2190 = vmatpush.bf16.msra.mxu3 %v3505_v38  ;;  %v3354_v37 = vld [vmem:[#allocation4 + $0x1f0] sm:$0xf0] }
 0x232   :  { %2220 = vmatpush.bf16.msra.mxu1 %v3381_v21  ;;  %v3357_v44 = vor.u32 %v3840_v34, %v3354_v37  ;;  %v3480_v21 = vld [vmem:[#allocation4 + $0x2d0] sm:$0xf] }
 0x233   :  { %v3448_v34 = vld [vmem:[#allocation4 + $0x290] sm:$0xf] }
 0x234   :  { %v3868_v37 = vld [vmem:[#allocation4 + $0x2ac] sm:$0xf0] }
 0x235   :  { %2178 = vmatpush.bf16.msra.mxu2 %v3217_v45  ;;  %2191 = vmatpush.bf16.msra.mxu3 %v3473_v5  ;;  %v3613_v45 = vor.u32 %v3904_v57, %v3610_v41  ;;  %v3576_v5 = vld [vmem:[#allocation4 + $0x390] sm:$0xf]  ;;  %v3864_v57 = vld [vmem:[#allocation4 + $0x294] sm:$0xf] }
 0x236   :  { %v3577_v52 = vor.u32 %v3900_v6, %v3576_v5  ;;  %v3450_v41 = vld [vmem:[#allocation4 + $0x2b0] sm:$0xf0]  ;;  %v3416_v5 = vld [vmem:[#allocation4 + $0x250] sm:$0xf] }
 0x237   :  { %v3860_v6 = vld [vmem:[#allocation4 + $0x26c] sm:$0xf0] }
 0x239   :  { %2179 = vmatpush.bf16.msra.mxu2 %v3185_v54  ;;  %2192 = vmatpush.bf16.msra.mxu3 %v3441_v55  ;;  %v3828_v54 = vld [vmem:[#allocation4 + $0x16c] sm:$0xf0]  ;;  %v3325_v55 = vor.u32 %v3832_v46, %v3322_v7  ;;  %v3792_v46 = vld [vmem:[#allocation4 + $0x54] sm:$0xf] }
 0x23a   :  { %v3289_v0 = vor.u32 %v3828_v54, %v3288_v53  ;;  %v3162_v7 = vld [vmem:[#allocation4 + $0x70] sm:$0xf0]  ;;  %v3384_v53 = vld [vmem:[#allocation4 + $0x210] sm:$0xf] }
 0x23b   :  { %v3852_v54 = vld [vmem:[#allocation4 + $0x22c] sm:$0xf0] }
 0x23d   :  { %2180 = vmatpush.bf16.msra.mxu2 %v3153_v61  ;;  %2193 = vmatpush.bf16.msra.mxu3 %v3409_v1  ;;  %v3290_v61 = vld [vmem:[#allocation4 + $0x170] sm:$0xf0]  ;;  %v3545_v1 = vor.u32 %v3892_v59, %v3544_v58 }
 0x23e   :  { %v3293_v4 = vor.u32 %v3824_v60, %v3290_v61  ;;  %v3784_v58 = vld [vmem:[#allocation4 + $0x14] sm:$0xf] }
 0x23f   :  { %v3130_v59 = vld [vmem:[#allocation4 + $0x30] sm:$0xf0] }
 0x240   :  { %v3848_v60 = vld [vmem:[#allocation4 + $0x214] sm:$0xf]  ;;  %v3133_v11 = vor.u32 %v3784_v58, %v3130_v59  ;;  %v3873_v58 = vld [vmem:[#allocation4 + $0x2dc] sm:$0xf] }
 0x241   :  { %2181 = vmatpush.bf16.msra.mxu2 %v3121_v13  ;;  %2194 = vmatpush.bf16.msra.mxu3 %v3377_v17  ;;  %v3880_v13 = vld [vmem:[#allocation4 + $0x314] sm:$0xf]  ;;  %v3224_v17 = vld [vmem:[#allocation4 + $0xd0] sm:$0xf]  ;;  %v3490_v59 = vld [vmem:[#allocation4 + $0x2f8] sm:$0xf0] }
 0x242   :  { %v3517_v20 = vor.u32 %v3880_v13, %v3514_v14  ;;  %v3386_v61 = vld [vmem:[#allocation4 + $0x230] sm:$0xf0]  ;;  %v3361_v13 = vor.u32 %v3845_v63, %v3360_v62  ;;  %v3200_v62 = vld [vmem:[#allocation4 + $0x98] sm:$0xf] }
 0x243   :  { %v3389_v12 = vor.u32 %v3848_v60, %v3386_v61  ;;  %v3805_v63 = vld [vmem:[#allocation4 + $0xb4] sm:$0xf0] }
 0x2a7   :  { %v1315_v25 = vpop.f32.mrf.mxu2  ;;  %v1328_v26 = vpop.f32.mrf.mxu3 }
 0x2a8   :  { %v1316_v27 = vadd.f32 %v1315_v25, %v1258_v23  ;;  %v1329_v28 = vadd.f32 %v1328_v26, %v1259_v24  ;;  %v3808_v23 = vld [vmem:[#allocation4 + $0xd4] sm:$0xf] }
 0x2a9   :  { %v3226_v24 = vld [vmem:[#allocation4 + $0xf0] sm:$0xf0] }
 0x2aa   :  { %v1332_v38 = vmax.f32 %v1316_v27, 0.0  ;;  %v1333_v39 = vmax.f32 %v1329_v28, 0.0  ;;  %v3872_v25 = vld [vmem:[#allocation4 + $0x2d4] sm:$0xf]  ;;  %v3225_v27 = vor.u32 %v3812_v18, %v3224_v17  ;;  %v3481_v28 = vor.u32 %v3876_v22, %v3480_v21  ;;  %v3833_v21 = vld [vmem:[#allocation4 + $0x19c] sm:$0xf] }
 0x2ab   :  { %v3482_v26 = vld [vmem:[#allocation4 + $0x2f0] sm:$0xf0]  ;;  %v3229_v32 = vor.u32 %v3808_v23, %v3226_v24  ;;  %v3621_v18 = vor.u32 %v3905_v9, %v3618_v10  ;;  %v3330_v22 = vld [vmem:[#allocation4 + $0x1b8] sm:$0xf0] }
 0x2ac   :  { %v4253_v35 = vpack.c.bf16 %v1332_v38, %v1332_v38  ;;  %v4255_v31 = vpack.c.bf16 %v1333_v39, %v1333_v39  ;;  %v3485_v33 = vor.u32 %v3872_v25, %v3482_v26  ;;  %v3800_v38 = vld [vmem:[#allocation4 + $0x94] sm:$0xf]  ;;  %v3897_v23 = vld [vmem:[#allocation4 + $0x39c] sm:$0xf] }
 0x2ad   :  { %v3194_v39 = vld [vmem:[#allocation4 + $0xb0] sm:$0xf0]  ;;  %v3586_v24 = vld [vmem:[#allocation4 + $0x3b8] sm:$0xf0] }
 0x2ae   :  { %2130 = vmatmul.bf16.vlgmr.msrb.gmra.mxu2 %v4253_v35  ;;  %2143 = vmatmul.bf16.vlgmr.msrb.gmra.mxu3 %v4255_v31  ;;  %v3865_v9 = vld [vmem:[#allocation4 + $0x29c] sm:$0xf] }
 0x2af   :  { %2156 = vmatmul.bf16.vlgmr.msrb.gmra.mxu0 %v4253_v35  ;;  %2169 = vmatmul.bf16.vlgmr.msrb.gmra.mxu1 %v4255_v31  ;;  %v1317_v49 = vpop.f32.mrf.mxu2  ;;  %v1330_v50 = vpop.f32.mrf.mxu3  ;;  %v3458_v10 = vld [vmem:[#allocation4 + $0x2b8] sm:$0xf0] }
 0x2b0   :  { %2226 = vmatpush.bf16.msrb.mxu2 %v3353_v36  ;;  %2239 = vmatpush.bf16.msrb.mxu3 %v3609_v40  ;;  %v3193_v36 = vor.u32 %v3804_v30, %v3192_v29  ;;  %v3449_v40 = vor.u32 %v3868_v37, %v3448_v34  ;;  %v3128_v49 = vld [vmem:[#allocation4 + $0x10] sm:$0xf]  ;;  %v3161_v50 = vor.u32 %v3796_v43, %v3160_v42  ;;  %v3825_v34 = vld [vmem:[#allocation4 + $0x15c] sm:$0xf] }
 0x2b1   :  { %2252 = vmatpush.bf16.msrb.mxu0 %v3357_v44  ;;  %2265 = vmatpush.bf16.msrb.mxu1 %v3613_v45  ;;  %v3197_v44 = vor.u32 %v3800_v38, %v3194_v39  ;;  %v3453_v45 = vor.u32 %v3864_v57, %v3450_v41  ;;  %v3333_v29 = vor.u32 %v3833_v21, %v3330_v22  ;;  %v3298_v37 = vld [vmem:[#allocation4 + $0x178] sm:$0xf0] }
 0x2b2   :  { %v3589_v30 = vor.u32 %v3897_v23, %v3586_v24  ;;  %v3889_v38 = vld [vmem:[#allocation4 + $0x35c] sm:$0xf]  ;;  %v3301_v42 = vor.u32 %v3825_v34, %v3298_v37 }
 0x2b3   :  { %v3554_v39 = vld [vmem:[#allocation4 + $0x378] sm:$0xf0] }
 0x2b4   :  { %2227 = vmatpush.bf16.msrb.mxu2 %v3321_v51  ;;  %2240 = vmatpush.bf16.msrb.mxu3 %v3577_v52  ;;  %v3417_v51 = vor.u32 %v3860_v6, %v3416_v5  ;;  %v3788_v52 = vld [vmem:[#allocation4 + $0x2c] sm:$0xf0]  ;;  %v3557_v43 = vor.u32 %v3889_v38, %v3554_v39  ;;  %v3817_v5 = vld [vmem:[#allocation4 + $0x11c] sm:$0xf] }
 0x2b5   :  { %2253 = vmatpush.bf16.msrb.mxu0 %v3325_v55  ;;  %2266 = vmatpush.bf16.msrb.mxu1 %v3581_v56  ;;  %v3165_v55 = vor.u32 %v3792_v46, %v3162_v7  ;;  %v3421_v56 = vor.u32 %v3856_v47, %v3418_v48  ;;  %v3129_v3 = vor.u32 %v3788_v52, %v3128_v49  ;;  %v3266_v6 = vld [vmem:[#allocation4 + $0x138] sm:$0xf0]  ;;  %v3232_v49 = vld [vmem:[#allocation4 + $0xd8] sm:$0xf] }
 0x2b6   :  { %v3881_v46 = vld [vmem:[#allocation4 + $0x31c] sm:$0xf] }
 0x2b7   :  { %v3522_v7 = vld [vmem:[#allocation4 + $0x338] sm:$0xf0] }
 0x2b8   :  { %2228 = vmatpush.bf16.msrb.mxu2 %v3289_v0  ;;  %2241 = vmatpush.bf16.msrb.mxu3 %v3545_v1  ;;  %v3616_v0 = vld [vmem:[#allocation4 + $0x3d8] sm:$0xf]  ;;  %v3525_v52 = vor.u32 %v3881_v46, %v3522_v7  ;;  %v3857_v21 = vld [vmem:[#allocation4 + $0x25c] sm:$0xf] }
 0x2b9   :  { %2254 = vmatpush.bf16.msrb.mxu0 %v3293_v4  ;;  %2267 = vmatpush.bf16.msrb.mxu1 %v3549_v8  ;;  %v3909_v1 = vld [vmem:[#allocation4 + $0x3f4] sm:$0xf0]  ;;  %v3385_v4 = vor.u32 %v3852_v54, %v3384_v53  ;;  %v3362_v8 = vld [vmem:[#allocation4 + $0x1f8] sm:$0xf0] }
 0x2ba   :  { %v3617_v14 = vor.u32 %v3909_v1, %v3616_v0  ;;  %v3365_v17 = vor.u32 %v3841_v2, %v3362_v8  ;;  %v3488_v53 = vld [vmem:[#allocation4 + $0x2d8] sm:$0xf]  ;;  %v3493_v1 = vor.u32 %v3873_v58, %v3490_v59  ;;  %v3202_v8 = vld [vmem:[#allocation4 + $0xb8] sm:$0xf0] }
 0x2bb   :  { %v3877_v54 = vld [vmem:[#allocation4 + $0x2f4] sm:$0xf0]  ;;  %v3426_v22 = vld [vmem:[#allocation4 + $0x278] sm:$0xf0] }
 0x2bc   :  { %2229 = vmatpush.bf16.msrb.mxu2 %v3257_v15  ;;  %2242 = vmatpush.bf16.msrb.mxu3 %v3513_v16  ;;  %v3328_v15 = vld [vmem:[#allocation4 + $0x198] sm:$0xf]  ;;  %v3489_v61 = vor.u32 %v3877_v54, %v3488_v53  ;;  %v3849_v34 = vld [vmem:[#allocation4 + $0x21c] sm:$0xf] }
 0x2bd   :  { %2255 = vmatpush.bf16.msrb.mxu0 %v3261_v19  ;;  %2268 = vmatpush.bf16.msrb.mxu1 %v3517_v20  ;;  %v3837_v16 = vld [vmem:[#allocation4 + $0x1b4] sm:$0xf0]  ;;  %v3394_v37 = vld [vmem:[#allocation4 + $0x238] sm:$0xf0] }
 0x2be   :  { %2182 = vmatmul.bf16.vlgmr.msra.gmra.mxu2 %v4253_v35  ;;  %2195 = vmatmul.bf16.vlgmr.msra.gmra.mxu3 %v4255_v31  ;;  %v3584_v19 = vld [vmem:[#allocation4 + $0x398] sm:$0xf]  ;;  %v3329_v25 = vor.u32 %v3837_v16, %v3328_v15  ;;  %v3461_v16 = vor.u32 %v3865_v9, %v3458_v10 }
 0x2bf   :  { %2208 = vmatmul.bf16.vlgmr.msra.gmra.mxu0 %v4253_v35  ;;  %2221 = vmatmul.bf16.vlgmr.msra.gmra.mxu1 %v4255_v31  ;;  %v3901_v20 = vld [vmem:[#allocation4 + $0x3b4] sm:$0xf0] }
 0x2c0   :  { %2230 = vmatpush.bf16.msrb.mxu2 %v3225_v27  ;;  %2243 = vmatpush.bf16.msrb.mxu3 %v3481_v28  ;;  %v3585_v26 = vor.u32 %v3901_v20, %v3584_v19  ;;  %v3296_v27 = vld [vmem:[#allocation4 + $0x158] sm:$0xf]  ;;  %v3793_v19 = vld [vmem:[#allocation4 + $0x5c] sm:$0xf] }
 0x2c1   :  { %2256 = vmatpush.bf16.msrb.mxu0 %v3229_v32  ;;  %2269 = vmatpush.bf16.msrb.mxu1 %v3485_v33  ;;  %v3829_v28 = vld [vmem:[#allocation4 + $0x174] sm:$0xf0]  ;;  %v3170_v20 = vld [vmem:[#allocation4 + $0x78] sm:$0xf0] }
 0x2c2   :  { %v3552_v32 = vld [vmem:[#allocation4 + $0x358] sm:$0xf]  ;;  %v3297_v57 = vor.u32 %v3829_v28, %v3296_v27  ;;  %v3173_v27 = vor.u32 %v3793_v19, %v3170_v20  ;;  %v3429_v28 = vor.u32 %v3857_v21, %v3426_v22 }
 0x2c3   :  { %v3893_v33 = vld [vmem:[#allocation4 + $0x374] sm:$0xf0] }
 0x2c4   :  { %2231 = vmatpush.bf16.msrb.mxu2 %v3193_v36  ;;  %2244 = vmatpush.bf16.msrb.mxu3 %v3449_v40  ;;  %v3553_v41 = vor.u32 %v3893_v33, %v3552_v32  ;;  %v3264_v36 = vld [vmem:[#allocation4 + $0x118] sm:$0xf]  ;;  %v3785_v32 = vld [vmem:[#allocation4 + $0x1c] sm:$0xf] }
 0x2c5   :  { %2257 = vmatpush.bf16.msrb.mxu0 %v3197_v44  ;;  %2270 = vmatpush.bf16.msrb.mxu1 %v3453_v45  ;;  %v3821_v40 = vld [vmem:[#allocation4 + $0x134] sm:$0xf0]  ;;  %v3138_v33 = vld [vmem:[#allocation4 + $0x38] sm:$0xf0] }
 0x2c6   :  { %v3520_v44 = vld [vmem:[#allocation4 + $0x318] sm:$0xf]  ;;  %v3265_v47 = vor.u32 %v3821_v40, %v3264_v36  ;;  %v4276_v36 = vld [vmem:[%s4325_s8] sm:$0xff] }
 0x2c7   :  { %v3885_v45 = vld [vmem:[#allocation4 + $0x334] sm:$0xf0]  ;;  %v1467_v40 = vperm.slane %v4276_v36, 1  ;;  %v1469_v53 = vperm.slane %v4276_v36, 3  ;;  %v1471_v21 = vperm.slane %v4276_v36, 5 }
 0x2c8   :  { %2232 = vmatpush.bf16.msrb.mxu2 %v3161_v50  ;;  %2245 = vmatpush.bf16.msrb.mxu3 %v3417_v51  ;;  %v3521_v48 = vor.u32 %v3885_v45, %v3520_v44  ;;  %v3813_v50 = vld [vmem:[#allocation4 + $0xf4] sm:$0xf0]  ;;  %v3269_v51 = vor.u32 %v3817_v5, %v3266_v6  ;;  %v1466_v45 = vperm.slane %v4276_v36, 0 }
 0x2c9   :  { %2258 = vmatpush.bf16.msrb.mxu0 %v3165_v55  ;;  %2271 = vmatpush.bf16.msrb.mxu1 %v3421_v56  ;;  %v3809_v55 = vld [vmem:[#allocation4 + $0xdc] sm:$0xf]  ;;  %v3233_v60 = vor.u32 %v3813_v50, %v3232_v49  ;;  %v3456_v2 = vld [vmem:[#allocation4 + $0x298] sm:$0xf] }
 0x2ca   :  { %v3234_v56 = vld [vmem:[#allocation4 + $0xf8] sm:$0xf0] }
 0x2cb   :  { %v3237_v0 = vor.u32 %v3809_v55, %v3234_v56 }
 0x2cc   :  { %2233 = vmatpush.bf16.msrb.mxu2 %v3129_v3  ;;  %2246 = vmatpush.bf16.msrb.mxu3 %v3385_v4  ;;  %v3869_v3 = vld [vmem:[#allocation4 + $0x2b4] sm:$0xf0]  ;;  %v3801_v4 = vld [vmem:[#allocation4 + $0x9c] sm:$0xf] }
 0x2cd   :  { %2259 = vmatpush.bf16.msrb.mxu0 %v3133_v11  ;;  %2272 = vmatpush.bf16.msrb.mxu1 %v3389_v12  ;;  %v3201_v11 = vor.u32 %v3805_v63, %v3200_v62  ;;  %v3457_v12 = vor.u32 %v3869_v3, %v3456_v2  ;;  %v3205_v15 = vor.u32 %v3801_v4, %v3202_v8 }
 0x2cf   :  { %2234 = vmatmul.bf16.vlgmr.msrb.gmra.mxu2 %v4253_v35  ;;  %2247 = vmatmul.bf16.vlgmr.msrb.gmra.mxu3 %v4255_v31 }
 0x2d0   :  { %2278 = vmatpush.bf16.msra.mxu2 %v3361_v13  ;;  %2291 = vmatpush.bf16.msra.mxu3 %v3617_v14  ;;  %v3168_v13 = vld [vmem:[#allocation4 + $0x58] sm:$0xf] }
 0x2d1   :  { %2304 = vmatpush.bf16.msra.mxu0 %v3365_v17  ;;  %2317 = vmatpush.bf16.msra.mxu1 %v3621_v18  ;;  %v3797_v14 = vld [vmem:[#allocation4 + $0x74] sm:$0xf0] }
 0x2d2   :  { %2260 = vmatmul.bf16.vlgmr.msrb.gmra.mxu0 %v4253_v35  ;;  %2273 = vmatmul.bf16.vlgmr.msrb.gmra.mxu1 %v4255_v31  ;;  %v3424_v17 = vld [vmem:[#allocation4 + $0x258] sm:$0xf]  ;;  %v3169_v23 = vor.u32 %v3797_v14, %v3168_v13 }
 0x2d3   :  { %v3861_v18 = vld [vmem:[#allocation4 + $0x274] sm:$0xf0] }
 0x2d4   :  { %2279 = vmatpush.bf16.msra.mxu2 %v3329_v25  ;;  %2292 = vmatpush.bf16.msra.mxu3 %v3585_v26  ;;  %v3425_v24 = vor.u32 %v3861_v18, %v3424_v17  ;;  %v3136_v25 = vld [vmem:[#allocation4 + $0x18] sm:$0xf] }
 0x2d5   :  { %2305 = vmatpush.bf16.msra.mxu0 %v3333_v29  ;;  %2318 = vmatpush.bf16.msra.mxu1 %v3589_v30  ;;  %v3789_v26 = vld [vmem:[#allocation4 + $0x34] sm:$0xf0] }
 0x2d6   :  { %v3392_v29 = vld [vmem:[#allocation4 + $0x218] sm:$0xf]  ;;  %v3137_v38 = vor.u32 %v3789_v26, %v3136_v25 }
 0x2d7   :  { %v3853_v30 = vld [vmem:[#allocation4 + $0x234] sm:$0xf0] }
 0x2d8   :  { %2280 = vmatpush.bf16.msra.mxu2 %v3297_v57  ;;  %2293 = vmatpush.bf16.msra.mxu3 %v3553_v41  ;;  %v3393_v39 = vor.u32 %v3853_v30, %v3392_v29  ;;  %v3141_v57 = vor.u32 %v3785_v32, %v3138_v33  ;;  %v3397_v41 = vor.u32 %v3849_v34, %v3394_v37 }
 0x2d9   :  { %2306 = vmatpush.bf16.msra.mxu0 %v3301_v42  ;;  %2319 = vmatpush.bf16.msra.mxu1 %v3557_v43 }
 0x2dc   :  { %2281 = vmatpush.bf16.msra.mxu2 %v3265_v47  ;;  %2294 = vmatpush.bf16.msra.mxu3 %v3521_v48 }
 0x2dd   :  { %2307 = vmatpush.bf16.msra.mxu0 %v3269_v51  ;;  %2320 = vmatpush.bf16.msra.mxu1 %v3525_v52 }
 0x2e0   :  { %2282 = vmatpush.bf16.msra.mxu2 %v3233_v60  ;;  %2295 = vmatpush.bf16.msra.mxu3 %v3489_v61  ;;  %v1468_v60 = vperm.slane %v4276_v36, 2 }
 0x2e1   :  { %2308 = vmatpush.bf16.msra.mxu0 %v3237_v0  ;;  %2321 = vmatpush.bf16.msra.mxu1 %v3493_v1 }
 0x2e4   :  { %2283 = vmatpush.bf16.msra.mxu2 %v3201_v11  ;;  %2296 = vmatpush.bf16.msra.mxu3 %v3457_v12 }
 0x2e5   :  { %2309 = vmatpush.bf16.msra.mxu0 %v3205_v15  ;;  %2322 = vmatpush.bf16.msra.mxu1 %v3461_v16 }
 0x2e8   :  { %2284 = vmatpush.bf16.msra.mxu2 %v3169_v23  ;;  %2297 = vmatpush.bf16.msra.mxu3 %v3425_v24 }
 0x2e9   :  { %2310 = vmatpush.bf16.msra.mxu0 %v3173_v27  ;;  %2323 = vmatpush.bf16.msra.mxu1 %v3429_v28  ;;  %v1472_v28 = vperm.slane %v4276_v36, 6 }
 0x2ec   :  { %2285 = vmatpush.bf16.msra.mxu2 %v3137_v38  ;;  %2298 = vmatpush.bf16.msra.mxu3 %v3393_v39 }
 0x2ed   :  { %2311 = vmatpush.bf16.msra.mxu0 %v3141_v57  ;;  %2324 = vmatpush.bf16.msra.mxu1 %v3397_v41 }
 0x2ef   :  { %2286 = vmatmul.bf16.vlgmr.msra.gmra.mxu2 %v4253_v35  ;;  %2299 = vmatmul.bf16.vlgmr.msra.gmra.mxu3 %v4255_v31 }
 0x2f0   :  { %2312 = vmatmul.bf16.vlgmr.msra.gmra.mxu0 %v4253_v35  ;;  %2325 = vmatmul.bf16.vlgmr.msra.gmra.mxu1 %v4255_v31 }
 0x32c   :  { %v2157_v42 = vpop.f32.mrf.mxu0  ;;  %v2170_v43 = vpop.f32.mrf.mxu1 }
 0x32d   :  { %v2158_v44 = vadd.f32 %v2157_v42, %v1467_v40 }
 0x32f   :  { %v2171_v5 = vadd.f32 %v2170_v43, %v2158_v44  ;;  %v1470_v43 = vperm.slane %v4276_v36, 4 }
 0x331   :  { %v3623_v6 = vmul.f32 -1.442695, %v2171_v5  ;;  %v2131_v46 = vpop.f32.mrf.mxu2  ;;  %v2144_v7 = vpop.f32.mrf.mxu3 }
 0x332   :  { %v2132_v47 = vadd.f32 %v2131_v46, %v1466_v45 }
 0x333   :  { %3920 = vpow2.f32 %v3623_v6 }
 0x334   :  { %v2145_v35 = vadd.f32 %v2144_v7, %v2132_v47  ;;  %v2159_v31 = vpop.f32.mrf.mxu0  ;;  %v2172_v48 = vpop.f32.mrf.mxu1 }
 0x336   :  { %v3622_v49 = vmul.f32 -1.442695, %v2145_v35 }
 0x338   :  { %3922 = vpow2.f32 %v3622_v49 }
 0x339   :  { %v3921_v50 = vpop.eup %3920  ;;  %v2133_v51 = vpop.f32.mrf.mxu2 }
 0x33a   :  { %v2146_v52 = vpop.f32.mrf.mxu3  ;;  %v2355_v54 = vadd.f32 1.0, %v3921_v50 }
 0x33c   :  { %3924 = vrcp.f32 %v2355_v54  ;;  %v2209_v55 = vpop.f32.mrf.mxu0  ;;  %v2222_v56 = vpop.f32.mrf.mxu1  ;;  %vm2382_vm2 = vweird.f32 %v2355_v54  ;;  %v2388_v22 = vand.u32 2147483648, %v2355_v54  ;;  %v2386_v25 = vand.u32 2147483647, %v2355_v54 }
 0x33d   :  { %v2210_v58 = vadd.f32 %v2209_v55, %v1469_v53 }
 0x33e   :  { %v3923_v59 = vpop.eup %3922  ;;  %v2389_v37 = vor.u32 1.1754944e-38, %v2388_v22  ;;  %vm2387_vm7 = vcmp.eq.f32.partialorder %v2386_v25, 8.507059e+37 }
 0x33f   :  { %v2354_v61 = vadd.f32 1.0, %v3923_v59  ;;  %v2223_v62 = vadd.f32 %v2222_v56, %v2210_v58 }
 0x341   :  { %3926 = vrcp.f32 %v2354_v61  ;;  %v2183_v63 = vpop.f32.mrf.mxu2  ;;  %v3625_v2 = vmul.f32 -1.442695, %v2223_v62  ;;  %v2373_v23 = vand.u32 2147483648, %v2354_v61  ;;  %v2371_v27 = vand.u32 2147483647, %v2354_v61 }
 0x342   :  { %v2196_v0 = vpop.f32.mrf.mxu3  ;;  %v3925_v1 = vpop.eup %3924  ;;  %v2184_v3 = vadd.f32 %v2183_v63, %v1468_v60  ;;  %vm2367_vm5 = vweird.f32 %v2354_v61 }
 0x343   :  { %v2378_v4 = vmul.f32 %v3925_v1, %v2355_v54  ;;  %3928 = vpow2.f32 %v3625_v2  ;;  %vm2383_vm1 = vweird.f32 %v3925_v1  ;;  %v2374_v38 = vor.u32 1.1754944e-38, %v2373_v23 }
 0x344   :  { %v2197_v8 = vadd.f32 %v2196_v0, %v2184_v3  ;;  %v2211_v9 = vpop.f32.mrf.mxu0  ;;  %v2224_v10 = vpop.f32.mrf.mxu1  ;;  %vm4285_vm4 = vmor %vm2382_vm2, %vm2383_vm1  ;;  %vm2372_vm8 = vcmp.eq.f32.partialorder %v2371_v27, 8.507059e+37 }
 0x345   :  { %v2379_v11 = vsub.f32 1.0, %v2378_v4 }
 0x346   :  { %v3624_v12 = vmul.f32 -1.442695, %v2197_v8 }
 0x347   :  { %v3927_v13 = vpop.eup %3926  ;;  %v2380_v14 = vmul.f32 %v3925_v1, %v2379_v11 }
 0x348   :  { %v2363_v15 = vmul.f32 %v3927_v13, %v2354_v61  ;;  %3930 = vpow2.f32 %v3624_v12  ;;  %vm2368_vm3 = vweird.f32 %v3927_v13 }
 0x349   :  { %v2185_v16 = vpop.f32.mrf.mxu2  ;;  %v3929_v18 = vpop.eup %3928  ;;  %v2381_v19 = vadd.f32 %v3925_v1, %v2380_v14  ;;  %vm2369_vm6 = vmor %vm2367_vm5, %vm2368_vm3 }
 0x34a   :  { %v2198_v17 = vpop.f32.mrf.mxu3  ;;  %v2364_v20 = vsub.f32 1.0, %v2363_v15  ;;  %v4283_v24 = vadd.f32 1.0, %v3929_v18 }
 0x34b   :  { %v2385_v30 = vsel %vm4285_vm4, %v3925_v1, %v2381_v19  ;;  %v1473_v19 = vperm.slane %v4276_v36, 7 }
 0x34c   :  { %v2365_v26 = vmul.f32 %v3927_v13, %v2364_v20  ;;  %3932 = vrcp.f32 %v4283_v24  ;;  %v2390_v40 = vsel %vm2387_vm7, %v2389_v37, %v2385_v30  ;;  %vm2412_vm10 = vweird.f32 %v4283_v24 }
 0x34d   :  { %v2418_v58 = vand.u32 2147483648, %v4283_v24  ;;  %v2416_v63 = vand.u32 2147483647, %v4283_v24 }
 0x34e   :  { %v3931_v29 = vpop.eup %3930  ;;  %v2366_v32 = vadd.f32 %v3927_v13, %v2365_v26 }
 0x34f   :  { %v2261_v33 = vpop.f32.mrf.mxu0  ;;  %v2274_v34 = vpop.f32.mrf.mxu1  ;;  %v2356_v39 = vadd.f32 1.0, %v3931_v29  ;;  %v2419_v8 = vor.u32 1.1754944e-38, %v2418_v58  ;;  %vm2417_vm15 = vcmp.eq.f32.partialorder %v2416_v63, 8.507059e+37 }
 0x350   :  { %v2262_v57 = vadd.f32 %v2261_v33, %v1471_v21  ;;  %v2370_v41 = vsel %vm2369_vm6, %v3927_v13, %v2366_v32 }
 0x351   :  { %v2375_v42 = vsel %vm2372_vm8, %v2374_v38, %v2370_v41  ;;  %3934 = vrcp.f32 %v2356_v39  ;;  %v2403_v59 = vand.u32 2147483648, %v2356_v39  ;;  %v2401_v1 = vand.u32 2147483647, %v2356_v39 }
 0x352   :  { %v2482_v44 = vpack.c.bf16 %v2390_v40, %v2375_v42  ;;  %v2275_v45 = vadd.f32 %v2274_v34, %v2262_v57  ;;  %v3933_v5 = vpop.eup %3932  ;;  %v2235_v6 = vpop.f32.mrf.mxu2  ;;  %vm2397_vm13 = vweird.f32 %v2356_v39 }
 0x353   :  { %v2248_v46 = vpop.f32.mrf.mxu3  ;;  %v2408_v7 = vmul.f32 %v3933_v5, %v4283_v24  ;;  %v2236_v35 = vadd.f32 %v2235_v6, %v1470_v43  ;;  %vm2413_vm9 = vweird.f32 %v3933_v5  ;;  %v2404_v9 = vor.u32 1.1754944e-38, %v2403_v59 }
 0x354   :  { %2486 = vst [vmem:[%s4327_s10] sm:$0xff] %v2482_v44  ;;  %v3627_v47 = vmul.f32 -1.442695, %v2275_v45  ;;  %vm2414_vm12 = vmor %vm2412_vm10, %vm2413_vm9  ;;  %vm2402_vm0 = vcmp.eq.f32.partialorder %v2401_v1, 8.507059e+37 }
 0x355   :  { %v2409_v31 = vsub.f32 1.0, %v2408_v7  ;;  %v2249_v51 = vadd.f32 %v2248_v46, %v2236_v35 }
 0x356   :  { %3936 = vpow2.f32 %v3627_v47 }
 0x357   :  { %v2263_v48 = vpop.f32.mrf.mxu0  ;;  %v2276_v49 = vpop.f32.mrf.mxu1  ;;  %v2410_v52 = vmul.f32 %v3933_v5, %v2409_v31  ;;  %v3626_v54 = vmul.f32 -1.442695, %v2249_v51 }
 0x358   :  { %v3935_v50 = vpop.eup %3934 }
 0x359   :  { %v2393_v53 = vmul.f32 %v3935_v50, %v2356_v39  ;;  %v2411_v55 = vadd.f32 %v3933_v5, %v2410_v52  ;;  %3938 = vpow2.f32 %v3626_v54  ;;  %vm2398_vm11 = vweird.f32 %v3935_v50 }
 0x35a   :  { %v2237_v60 = vpop.f32.mrf.mxu2  ;;  %vm2399_vm14 = vmor %vm2397_vm13, %vm2398_vm11 }
 0x35b   :  { %v2394_v56 = vsub.f32 1.0, %v2393_v53  ;;  %v2250_v61 = vpop.f32.mrf.mxu3  ;;  %v2415_v3 = vsel %vm2414_vm12, %v3933_v5, %v2411_v55 }
 0x35c   :  { %v3937_v62 = vpop.eup %3936  ;;  %v2420_v12 = vsel %vm2417_vm15, %v2419_v8, %v2415_v3 }
 0x35d   :  { %v2395_v0 = vmul.f32 %v3935_v50, %v2394_v56  ;;  %v2359_v2 = vadd.f32 1.0, %v3937_v62 }
 0x35f   :  { %v2396_v4 = vadd.f32 %v3935_v50, %v2395_v0  ;;  %3940 = vrcp.f32 %v2359_v2  ;;  %v3939_v11 = vpop.eup %3938  ;;  %vm2442_vm2 = vweird.f32 %v2359_v2  ;;  %v2448_v29 = vand.u32 2147483648, %v2359_v2 }
 0x360   :  { %v2358_v15 = vadd.f32 1.0, %v3939_v11  ;;  %v2446_v33 = vand.u32 2147483647, %v2359_v2 }
 0x361   :  { %v2400_v10 = vsel %vm2399_vm14, %v3935_v50, %v2396_v4  ;;  %v2449_v43 = vor.u32 1.1754944e-38, %v2448_v29 }
 0x362   :  { %v2405_v13 = vsel %vm2402_vm0, %v2404_v9, %v2400_v10  ;;  %3942 = vrcp.f32 %v2358_v15  ;;  %v2433_v30 = vand.u32 2147483648, %v2358_v15  ;;  %v2431_v37 = vand.u32 2147483647, %v2358_v15 }
 0x363   :  { %v2483_v14 = vpack.c.bf16 %v2420_v12, %v2405_v13  ;;  %vm2427_vm5 = vweird.f32 %v2358_v15  ;;  %vm2447_vm7 = vcmp.eq.f32.partialorder %v2446_v33, 8.507059e+37 }
 0x364   :  { %v2434_v44 = vor.u32 1.1754944e-38, %v2433_v30  ;;  %vm2432_vm8 = vcmp.eq.f32.partialorder %v2431_v37, 8.507059e+37 }
 0x365   :  { %2487 = vst [vmem:[%s4327_s10 + $0x8] sm:$0xff] %v2483_v14  ;;  %v3941_v16 = vpop.eup %3940 }
 0x366   :  { %v2438_v17 = vmul.f32 %v3941_v16, %v2359_v2  ;;  %vm2443_vm1 = vweird.f32 %v3941_v16 }
 0x367   :  { %vm4305_vm4 = vmor %vm2442_vm2, %vm2443_vm1 }
 0x368   :  { %v2439_v18 = vsub.f32 1.0, %v2438_v17  ;;  %v3943_v20 = vpop.eup %3942 }
 0x369   :  { %v2423_v22 = vmul.f32 %v3943_v20, %v2358_v15  ;;  %vm2428_vm3 = vweird.f32 %v3943_v20 }
 0x36a   :  { %v2440_v21 = vmul.f32 %v3941_v16, %v2439_v18  ;;  %vm2429_vm6 = vmor %vm2427_vm5, %vm2428_vm3 }
 0x36b   :  { %v2424_v27 = vsub.f32 1.0, %v2423_v22 }
 0x36c   :  { %v2441_v26 = vadd.f32 %v3941_v16, %v2440_v21 }
 0x36d   :  { %v2313_v23 = vpop.f32.mrf.mxu0  ;;  %v2326_v24 = vpop.f32.mrf.mxu1  ;;  %v2425_v34 = vmul.f32 %v3943_v20, %v2424_v27 }
 0x36e   :  { %v2314_v25 = vadd.f32 %v2313_v23, %v1473_v19  ;;  %v2445_v40 = vsel %vm4305_vm4, %v3941_v16, %v2441_v26 }
 0x36f   :  { %v2426_v42 = vadd.f32 %v3943_v20, %v2425_v34  ;;  %v2450_v7 = vsel %vm2447_vm7, %v2449_v43, %v2445_v40 }
 0x370   :  { %v2327_v32 = vadd.f32 %v2326_v24, %v2314_v25 }
 0x371   :  { %v2430_v45 = vsel %vm2429_vm6, %v3943_v20, %v2426_v42 }
 0x372   :  { %v3629_v39 = vmul.f32 -1.442695, %v2327_v32  ;;  %v2287_v57 = vpop.f32.mrf.mxu2  ;;  %v2300_v41 = vpop.f32.mrf.mxu3  ;;  %v2435_v47 = vsel %vm2432_vm8, %v2434_v44, %v2430_v45 }
 0x373   :  { %v2288_v36 = vadd.f32 %v2287_v57, %v1472_v28  ;;  %v2484_v35 = vpack.c.bf16 %v2450_v7, %v2435_v47 }
 0x374   :  { %3944 = vpow2.f32 %v3629_v39 }
 0x375   :  { %v2301_v5 = vadd.f32 %v2300_v41, %v2288_v36  ;;  %v2315_v6 = vpop.f32.mrf.mxu0  ;;  %v2328_v46 = vpop.f32.mrf.mxu1  ;;  %2488 = vst [vmem:[%s4327_s10 + $0x10] sm:$0xff] %v2484_v35 }
 0x377   :  { %v3628_v31 = vmul.f32 -1.442695, %v2301_v5 }
 0x379   :  { %3946 = vpow2.f32 %v3628_v31 }
 0x37a   :  { %v3945_v48 = vpop.eup %3944  ;;  %v2289_v49 = vpop.f32.mrf.mxu2 }
 0x37b   :  { %v2302_v50 = vpop.f32.mrf.mxu3  ;;  %v2361_v51 = vadd.f32 1.0, %v3945_v48 }
 0x37d   :  { %3948 = vrcp.f32 %v2361_v51  ;;  %vm2472_vm10 = vweird.f32 %v2361_v51  ;;  %v2478_v63 = vand.u32 2147483648, %v2361_v51  ;;  %v2476_v1 = vand.u32 2147483647, %v2361_v51 }
 0x37f   :  { %v3947_v52 = vpop.eup %3946  ;;  %v2479_v9 = vor.u32 1.1754944e-38, %v2478_v63  ;;  %vm2477_vm15 = vcmp.eq.f32.partialorder %v2476_v1, 8.507059e+37 }
 0x380   :  { %v2360_v53 = vadd.f32 1.0, %v3947_v52 }
 0x382   :  { %3950 = vrcp.f32 %v2360_v53  ;;  %v2463_v0 = vand.u32 2147483648, %v2360_v53  ;;  %v2461_v3 = vand.u32 2147483647, %v2360_v53  ;;  %vm2457_vm13 = vweird.f32 %v2360_v53 }
 0x383   :  { %v3949_v54 = vpop.eup %3948 }
 0x384   :  { %v2468_v55 = vmul.f32 %v3949_v54, %v2361_v51  ;;  %vm2473_vm9 = vweird.f32 %v3949_v54  ;;  %v2464_v10 = vor.u32 1.1754944e-38, %v2463_v0  ;;  %vm2462_vm0 = vcmp.eq.f32.partialorder %v2461_v3, 8.507059e+37 }
 0x385   :  { %vm2474_vm12 = vmor %vm2472_vm10, %vm2473_vm9 }
 0x386   :  { %v2469_v56 = vsub.f32 1.0, %v2468_v55 }
 0x388   :  { %v3951_v58 = vpop.eup %3950  ;;  %v2470_v59 = vmul.f32 %v3949_v54, %v2469_v56 }
 0x389   :  { %v2453_v60 = vmul.f32 %v3951_v58, %v2360_v53  ;;  %vm2458_vm11 = vweird.f32 %v3951_v58 }
 0x38a   :  { %v2471_v61 = vadd.f32 %v3949_v54, %v2470_v59  ;;  %vm2459_vm14 = vmor %vm2457_vm13, %vm2458_vm11 }
 0x38b   :  { %v2454_v62 = vsub.f32 1.0, %v2453_v60 }
 0x38c   :  { %v2475_v4 = vsel %vm2474_vm12, %v3949_v54, %v2471_v61 }
 0x38d   :  { %v2455_v2 = vmul.f32 %v3951_v58, %v2454_v62  ;;  %v2480_v12 = vsel %vm2477_vm15, %v2479_v9, %v2475_v4 }
 0x38f   :  { %v2456_v8 = vadd.f32 %v3951_v58, %v2455_v2 }
 0x391   :  { %v2460_v11 = vsel %vm2459_vm14, %v3951_v58, %v2456_v8 }
 0x392   :  { %v2465_v13 = vsel %vm2462_vm0, %v2464_v10, %v2460_v11 }
 0x393   :  { %v2485_v14 = vpack.c.bf16 %v2480_v12, %v2465_v13 }
 0x395   :  { %2489 = vst [vmem:[%s4327_s10 + $0x18] sm:$0xff] %v2485_v14 }
 0x396   :  { %2498 = vsyncpa [#allocation3], 1 }
 0x397   :  { %2499 = vsyncpa [#allocation5], 1 }

</bundles_post_ra>
